<compile_context>
chip_gen: v7x
topology: tpu7x:2x2x1
jax: 0.10.0
libtpu: 0.0.40
codegen_flags: <defaults>
</compile_context>

<pallas_src>
import functools

import jax
import jax.numpy as jnp
from jax.experimental import pallas as pl
from jax.experimental.pallas import tpu as pltpu

LN_EPS = 1e-5     # torch.nn.LayerNorm default eps
GEN_EPS = 1e-7    # GENConv message eps


def _node_tile(n):
    for t in (512, 256, 128):
        if n % t == 0:
            return t
    return n          # small / odd N -> single full block


def _edge_tile(e_pad):
    for t in (512, 256, 128):
        if e_pad % t == 0:
            return t
    return e_pad


# ----------------------------------------------------------------------------
# Fused GENConv layer kernel (gather -> segment softmax -> +x_r -> MLP -> [+h]).
# Grid: (edge tiles ["arbitrary"],).  Node dim is fully VMEM-resident.
#   message_e = relu(xin[src_e] + edge_attr_e) + 1e-7
#   alpha     = per-dst, per-feature softmax of t * message (online running max)
#   aggr_v    = sum_e 1[dst_e == v] message_e * alpha_e
#   conv      = MLP(aggr + xin)   MLP = Lin(H,2H) -> LayerNorm -> ReLU -> Lin(2H,H)
#   out       = h + conv  (res+)   or   conv  (first layer)
# ----------------------------------------------------------------------------
def _make_genconv_kernel(add_residual: bool):
    def kernel(t_ref, xin_ref, h_ref, src_ref, dst_ref, ea_ref,
               w1_ref, b1_ref, g1_ref, be1_ref, w2_ref, b2_ref,
               o_ref, m_sc, den_sc, num_sc):
        k = pl.program_id(0)                       # edge-tile index
        N = xin_ref.shape[0]
        TE = ea_ref.shape[0]

        @pl.when(k == 0)
        def _():
            m_sc[...] = jnp.full_like(m_sc, -1e30)
            den_sc[...] = jnp.zeros_like(den_sc)
            num_sc[...] = jnp.zeros_like(num_sc)

        t = t_ref[0, 0]                            # temperature, from SMEM
        src = src_ref[...]                         # (TE, 1) int32
        dst = dst_ref[...]                         # (1, TE) int32 (padded edges: dst = N)

        # Gather source node features via an in-kernel one-hot (no HBM one-hot).
        src_oh = (jax.lax.broadcasted_iota(jnp.int32, (TE, N), 1) == src
                  ).astype(jnp.float32)                                   # (TE, N)
        x_j = jnp.dot(src_oh, xin_ref[...],
                      preferred_element_type=jnp.float32)                 # (TE, H)
        msg = jnp.maximum(x_j + ea_ref[...], 0.0) + GEN_EPS               # (TE, H)
        scaled = msg * t

        # Online per-feature max + rescale of the running segment sums (the max
        # is a shared shift per feature column, so num/den stay consistent).
        tile_max = jnp.max(scaled, axis=0, keepdims=True)                 # (1, H)
        m_new = jnp.maximum(m_sc[...], tile_max)
        alpha = jnp.exp(m_sc[...] - m_new)                                # (1, H)
        expw = jnp.exp(scaled - m_new)                                    # (TE, H)

        # Destination one-hot scatter; padded edges (dst = N) match nothing.
        dst_oh = (jax.lax.broadcasted_iota(jnp.int32, (N, TE), 0) == dst
                  ).astype(jnp.float32)                                   # (N, TE)

        den_sc[...] = den_sc[...] * alpha + jnp.dot(
            dst_oh, expw, preferred_element_type=jnp.float32)
        num_sc[...] = num_sc[...] * alpha + jnp.dot(
            dst_oh, expw * msg, preferred_element_type=jnp.float32)
        m_sc[...] = m_new

        @pl.when(k == pl.num_programs(0) - 1)
        def _():
            den = den_sc[...]
            den = jnp.where(den > 0.0, den, 1.0)          # isolated nodes -> aggr 0
            aggr = num_sc[...] * pl.reciprocal(den, approx=True)
            out = aggr + xin_ref[...]                     # GENConv "+ x_r"

            # GENConv MLP: Linear(H,2H) -> LayerNorm(2H) -> ReLU -> Linear(2H,H)
            hdn = jnp.dot(out, w1_ref[...],
                          preferred_element_type=jnp.float32) + b1_ref[...]
            mu = jnp.mean(hdn, axis=-1, keepdims=True)
            var = jnp.mean((hdn - mu) ** 2, axis=-1, keepdims=True)
            hdn = (hdn - mu) * jax.lax.rsqrt(var + LN_EPS) * g1_ref[...] + be1_ref[...]
            hdn = jnp.maximum(hdn, 0.0)
            conv = jnp.dot(hdn, w2_ref[...],
                           preferred_element_type=jnp.float32) + b2_ref[...]
            if add_residual:
                o_ref[...] = h_ref[...] + conv            # DeepGCN 'res+'
            else:
                o_ref[...] = conv
    return kernel


def genconv_layer(xin, h, src_p, dst_p, ea_p, conv_p, *, add_residual):
    """xin: GENConv input (normalized x for res+ layers); h: residual carrier."""
    N, H = xin.shape
    E_pad = ea_p.shape[0]
    TE = _edge_tile(E_pad)

    args = (conv_p['t'], xin, h, src_p, dst_p, ea_p,
            conv_p['w1'], conv_p['b1'], conv_p['g1'], conv_p['be1'],
            conv_p['w2'], conv_p['b2'])
    in_specs = [
        pl.BlockSpec(memory_space=pltpu.MemorySpace.SMEM),        # t (1,1)
        pl.BlockSpec((N, H),      lambda k: (0, 0)),              # xin (resident)
        pl.BlockSpec((N, H),      lambda k: (0, 0)),              # residual h (resident)
        pl.BlockSpec((TE, 1),     lambda k: (k, 0)),              # src indices
        pl.BlockSpec((1, TE),     lambda k: (0, k)),              # dst indices
        pl.BlockSpec((TE, H),     lambda k: (k, 0)),              # edge_attr tile
        pl.BlockSpec((H, 2 * H),  lambda k: (0, 0)),              # w1
        pl.BlockSpec((1, 2 * H),  lambda k: (0, 0)),              # b1
        pl.BlockSpec((1, 2 * H),  lambda k: (0, 0)),              # ln gamma
        pl.BlockSpec((1, 2 * H),  lambda k: (0, 0)),              # ln beta
        pl.BlockSpec((2 * H, H),  lambda k: (0, 0)),              # w2
        pl.BlockSpec((1, H),      lambda k: (0, 0)),              # b2
    ]
    return pl.pallas_call(
        _make_genconv_kernel(add_residual),
        out_shape=jax.ShapeDtypeStruct((N, H), jnp.float32),
        grid_spec=pltpu.PrefetchScalarGridSpec(
            num_scalar_prefetch=0,
            grid=(E_pad // TE,),
            in_specs=in_specs,
            out_specs=pl.BlockSpec((N, H), lambda k: (0, 0)),
            scratch_shapes=[pltpu.VMEM((1, H), jnp.float32),      # running col max
                            pltpu.VMEM((N, H), jnp.float32),      # denom accumulator
                            pltpu.VMEM((N, H), jnp.float32)]),    # numer accumulator
        compiler_params=pltpu.CompilerParams(
            dimension_semantics=("arbitrary",)),
    )(*args)


# ----------------------------------------------------------------------------
# LayerNorm (elementwise affine) + Mish: y * tanh(softplus(y)), node-tiled.
# ----------------------------------------------------------------------------
def _ln_mish_kernel(x_ref, g_ref, b_ref, o_ref):
    x = x_ref[...]
    mu = jnp.mean(x, axis=-1, keepdims=True)
    var = jnp.mean((x - mu) ** 2, axis=-1, keepdims=True)
    y = (x - mu) * jax.lax.rsqrt(var + LN_EPS) * g_ref[...] + b_ref[...]
    sp = jnp.maximum(y, 0.0) + jnp.log1p(jnp.exp(-jnp.abs(y)))     # stable softplus
    o_ref[...] = y * jnp.tanh(sp)


def ln_mish(x, gamma, beta):
    N, H = x.shape
    TN = _node_tile(N)
    return pl.pallas_call(
        _ln_mish_kernel,
        out_shape=jax.ShapeDtypeStruct((N, H), jnp.float32),
        grid_spec=pltpu.PrefetchScalarGridSpec(
            num_scalar_prefetch=0,
            grid=(N // TN,),
            in_specs=[pl.BlockSpec((TN, H), lambda i: (i, 0)),
                      pl.BlockSpec((1, H), lambda i: (0, 0)),
                      pl.BlockSpec((1, H), lambda i: (0, 0))],
            out_specs=pl.BlockSpec((TN, H), lambda i: (i, 0))),
        compiler_params=pltpu.CompilerParams(dimension_semantics=("parallel",)),
    )(x, gamma, beta)


# ----------------------------------------------------------------------------
# global_mean_pool + final Linear.  Node-tiled; graph branch reuses x@W and
# accumulates both sums and counts in VMEM scratch (no (G,N) pool matrix in HBM).
# ----------------------------------------------------------------------------
def _pool_lin_kernel(x_ref, batch_ref, w_ref, b_ref, node_ref, graph_ref, gacc, cnt):
    i = pl.program_id(0)
    G = gacc.shape[0]
    TN = x_ref.shape[0]

    @pl.when(i == 0)
    def _():
        gacc[...] = jnp.zeros_like(gacc)
        cnt[...] = jnp.zeros_like(cnt)

    xw = jnp.dot(x_ref[...], w_ref[...], preferred_element_type=jnp.float32)   # (TN, O)
    node_ref[...] = xw + b_ref[...]

    oh = (jax.lax.broadcasted_iota(jnp.int32, (G, TN), 0) == batch_ref[...]
          ).astype(jnp.float32)                                                # (G, TN)
    gacc[...] += jnp.dot(oh, xw, preferred_element_type=jnp.float32)
    cnt[...] += jnp.sum(oh, axis=1, keepdims=True)

    @pl.when(i == pl.num_programs(0) - 1)
    def _():
        inv = pl.reciprocal(jnp.maximum(cnt[...], 1.0), approx=True)
        graph_ref[...] = gacc[...] * inv + b_ref[...]


def pool_lin(x, batch2d, w, b, num_graphs):
    N, H = x.shape
    O = w.shape[1]
    G = num_graphs
    TN = _node_tile(N)
    return pl.pallas_call(
        _pool_lin_kernel,
        out_shape=(jax.ShapeDtypeStruct((N, O), jnp.float32),
                   jax.ShapeDtypeStruct((G, O), jnp.float32)),
        grid_spec=pltpu.PrefetchScalarGridSpec(
            num_scalar_prefetch=0,
            grid=(N // TN,),
            in_specs=[pl.BlockSpec((TN, H), lambda i: (i, 0)),
                      pl.BlockSpec((1, TN), lambda i: (0, i)),
                      pl.BlockSpec((H, O), lambda i: (0, 0)),
                      pl.BlockSpec((1, O), lambda i: (0, 0))],
            out_specs=[pl.BlockSpec((TN, O), lambda i: (i, 0)),
                       pl.BlockSpec((G, O), lambda i: (0, 0))],
            scratch_shapes=[pltpu.VMEM((G, O), jnp.float32),
                            pltpu.VMEM((G, 1), jnp.float32)]),
        compiler_params=pltpu.CompilerParams(dimension_semantics=("arbitrary",)),
    )(x, batch2d, w, b)


# ----------------------------------------------------------------------------
# Parameters (deterministic, synthetic) and the full forward pass
# ----------------------------------------------------------------------------
def init_params(key, hidden, out_ch, num_layers):
    keys = iter(jax.random.split(key, num_layers * 4 + 2))
    scale = 0.1
    layers = []
    for _ in range(num_layers):
        conv = {
            't':  jnp.ones((1, 1), jnp.float32),                        # learn_t init 1.0
            'w1': scale * jax.random.normal(next(keys), (hidden, 2 * hidden), jnp.float32),
            'b1': 0.05 * jax.random.normal(next(keys), (1, 2 * hidden), jnp.float32),
            'g1': jnp.ones((1, 2 * hidden), jnp.float32),               # MLP LayerNorm
            'be1': jnp.zeros((1, 2 * hidden), jnp.float32),
            'w2': scale * jax.random.normal(next(keys), (2 * hidden, hidden), jnp.float32),
            'b2': 0.05 * jax.random.normal(next(keys), (1, hidden), jnp.float32),
        }
        layers.append({
            'conv': conv,
            'norm_g': jnp.ones((1, hidden), jnp.float32),               # DeepGCN LayerNorm
            'norm_b': jnp.zeros((1, hidden), jnp.float32),
        })
    lin_w = scale * jax.random.normal(next(keys), (hidden, out_ch), jnp.float32)
    lin_b = 0.05 * jax.random.normal(next(keys), (1, out_ch), jnp.float32)
    return {'layers': layers, 'lin_w': lin_w, 'lin_b': lin_b}


@functools.partial(jax.jit, static_argnums=(5,))
def graph_encoder_forward(params, x, edge_index, edge_attr, batch, num_graphs):
    # TODO(synk): dropout_edge(p=0.2) / F.dropout / ckpt_grad are training-only;
    # forward is implemented in eval mode where they are identities.
    N, H = x.shape
    E = edge_index.shape[1]

    # Edge index arrays -> small int32 arrays; pad E to the edge-tile multiple.
    # Padded edges get dst = N (out of range) so they contribute nothing.
    E_pad = max(((E + 127) // 128) * 128, 128)
    src = edge_index[0].astype(jnp.int32)
    dst = edge_index[1].astype(jnp.int32)
    src_p = jnp.pad(src, (0, E_pad - E)).reshape(E_pad, 1)
    dst_p = jnp.pad(dst, (0, E_pad - E), constant_values=N).reshape(1, E_pad)
    ea_p = jnp.pad(edge_attr, ((0, E_pad - E), (0, 0)))

    layers = params['layers']
    # x = self.layers[0].conv(x, edge_index, edge_attr)
    h = genconv_layer(x, x, src_p, dst_p, ea_p, layers[0]['conv'], add_residual=False)
    # DeepGCN 'res+' layers: x = x + conv(dropout(act(norm(x))))
    # (ln_mish stays a separate node-parallel kernel because its full output feeds
    #  the edge gather; conv + residual are fused.)
    for lp in layers[1:]:
        y = ln_mish(h, lp['norm_g'], lp['norm_b'])
        h = genconv_layer(y, h, src_p, dst_p, ea_p, lp['conv'], add_residual=True)
    # x = self.layers[0].act(self.layers[0].norm(x))
    h = ln_mish(h, layers[0]['norm_g'], layers[0]['norm_b'])

    # global_mean_pool + final Linear (one kernel; graph branch reuses x@W)
    batch2d = batch.astype(jnp.int32).reshape(1, N)
    return pool_lin(h, batch2d, params['lin_w'], params['lin_b'], num_graphs)


if __name__ == "__main__":
    hidden_channels = 32
    graph_out_channels = 16
    num_layers = 3
    dropout = 0.1          # unused in eval-mode forward
    N, E, G = 16, 32, 2    # nodes, edges, graphs

    key = jax.random.PRNGKey(0)
    kx, ke, ks, kd, kp = jax.random.split(key, 5)
    x = jax.random.normal(kx, (N, hidden_channels), jnp.float32)
    edge_attr = jax.random.normal(ke, (E, hidden_channels), jnp.float32)
    src = jax.random.randint(ks, (E,), 0, N)
    dst = jax.random.randint(kd, (E,), 0, N)
    edge_index = jnp.stack([src, dst], axis=0)                          # (2, E)
    batch = jnp.concatenate([jnp.zeros((N // 2,), jnp.int32),
                             jnp.ones((N - N // 2,), jnp.int32)])       # (N,)

    params = init_params(kp, hidden_channels, graph_out_channels, num_layers)

    node_out, graph_out = graph_encoder_forward(
        params, x, edge_index, edge_attr, batch, G)
    jax.block_until_ready((node_out, graph_out))

    assert node_out.shape == (N, graph_out_channels)
    assert graph_out.shape == (G, graph_out_channels)
    assert bool(jnp.all(jnp.isfinite(node_out)))
    assert bool(jnp.all(jnp.isfinite(graph_out)))
    print("KERNEL_OK")
</pallas_src>

<mosaic_0001>
module attributes {stable_mosaic.version = 11 : i64} {
  func.func @_ln_mish_kernel(%arg0: i32, %arg1: memref<16x32xf32, #tpu.memory_space<vmem>>, %arg2: memref<1x32xf32, #tpu.memory_space<vmem>>, %arg3: memref<1x32xf32, #tpu.memory_space<vmem>>, %arg4: memref<16x32xf32, #tpu.memory_space<vmem>>) attributes {dimension_semantics = [#tpu.dimension_semantics<parallel>], iteration_bounds = array<i64: 1>, scalar_prefetch = 0 : i64, scratch_operands = 0 : i64, tpu.core_type = #tpu.core_type<tc>, window_params = [{transform_indices = @transform_0, window_bounds = array<i64: 16, 32>}, {pipeline_mode = #tpu.pipeline_mode<synchronous>, transform_indices = @transform_1, window_bounds = array<i64: 1, 32>}, {pipeline_mode = #tpu.pipeline_mode<synchronous>, transform_indices = @transform_2, window_bounds = array<i64: 1, 32>}, {transform_indices = @transform_3, window_bounds = array<i64: 16, 32>}]} {
    %c0 = arith.constant 0 : index
    %c0_0 = arith.constant 0 : index
    %0 = vector.load %arg1[%c0, %c0_0] : memref<16x32xf32, #tpu.memory_space<vmem>>, vector<16x32xf32>
    %cst = arith.constant dense<0.000000e+00> : vector<16xf32>
    %1 = vector.multi_reduction <add>, %0, %cst [1] : vector<16x32xf32> to vector<16xf32>
    %2 = vector.shape_cast %1 : vector<16xf32> to vector<16x1xf32>
    %cst_1 = arith.constant 3.200000e+01 : f32
    %3 = vector.broadcast %cst_1 : f32 to vector<16x1xf32>
    %4 = arith.divf %2, %3 : vector<16x1xf32>
    %5 = vector.broadcast %4 : vector<16x1xf32> to vector<16x32xf32>
    %6 = arith.subf %0, %5 : vector<16x32xf32>
    %7 = arith.mulf %6, %6 : vector<16x32xf32>
    %cst_2 = arith.constant dense<0.000000e+00> : vector<16xf32>
    %8 = vector.multi_reduction <add>, %7, %cst_2 [1] : vector<16x32xf32> to vector<16xf32>
    %9 = vector.shape_cast %8 : vector<16xf32> to vector<16x1xf32>
    %cst_3 = arith.constant 3.200000e+01 : f32
    %10 = vector.broadcast %cst_3 : f32 to vector<16x1xf32>
    %11 = arith.divf %9, %10 : vector<16x1xf32>
    %12 = vector.broadcast %4 : vector<16x1xf32> to vector<16x32xf32>
    %13 = arith.subf %0, %12 : vector<16x32xf32>
    %cst_4 = arith.constant 9.99999974E-6 : f32
    %14 = vector.broadcast %cst_4 : f32 to vector<16x1xf32>
    %15 = arith.addf %11, %14 : vector<16x1xf32>
    %16 = math.rsqrt %15 : vector<16x1xf32>
    %17 = vector.broadcast %16 : vector<16x1xf32> to vector<16x32xf32>
    %18 = arith.mulf %13, %17 : vector<16x32xf32>
    %c0_5 = arith.constant 0 : index
    %c0_6 = arith.constant 0 : index
    %19 = vector.load %arg2[%c0_5, %c0_6] : memref<1x32xf32, #tpu.memory_space<vmem>>, vector<1x32xf32>
    %20 = vector.broadcast %19 : vector<1x32xf32> to vector<16x32xf32>
    %21 = arith.mulf %18, %20 : vector<16x32xf32>
    %c0_7 = arith.constant 0 : index
    %c0_8 = arith.constant 0 : index
    %22 = vector.load %arg3[%c0_7, %c0_8] : memref<1x32xf32, #tpu.memory_space<vmem>>, vector<1x32xf32>
    %23 = vector.broadcast %22 : vector<1x32xf32> to vector<16x32xf32>
    %24 = arith.addf %21, %23 : vector<16x32xf32>
    %cst_9 = arith.constant 0.000000e+00 : f32
    %25 = vector.broadcast %cst_9 : f32 to vector<16x32xf32>
    %26 = arith.maximumf %24, %25 : vector<16x32xf32>
    %27 = math.absf %24 : vector<16x32xf32>
    %cst_10 = arith.constant 0.000000e+00 : f32
    %28 = vector.broadcast %cst_10 : f32 to vector<16x32xf32>
    %29 = arith.subf %28, %27 : vector<16x32xf32>
    %30 = math.exp %29 : vector<16x32xf32>
    %31 = math.log1p %30 : vector<16x32xf32>
    %32 = arith.addf %26, %31 : vector<16x32xf32>
    %33 = math.tanh %32 : vector<16x32xf32>
    %34 = arith.mulf %24, %33 : vector<16x32xf32>
    %c0_11 = arith.constant 0 : index
    %c0_12 = arith.constant 0 : index
    %35 = vector.load %arg4[%c0_11, %c0_12] : memref<16x32xf32, #tpu.memory_space<vmem>>, vector<16x32xf32>
    tpu.vector_store %arg4[%c0_11, %c0_12], %34 {strides = array<i32>} : memref<16x32xf32, #tpu.memory_space<vmem>>, vector<16x32xf32>,
    return
  }
  func.func @transform_0(%arg0: i32) -> (i32, i32) {
    %c0_i32 = arith.constant 0 : i32
    %c0_i32_0 = arith.constant 0 : i32
    return %arg0, %c0_i32 : i32, i32
  }
  func.func @transform_1(%arg0: i32) -> (i32, i32) {
    %c0_i32 = arith.constant 0 : i32
    %c0_i32_0 = arith.constant 0 : i32
    %c0_i32_1 = arith.constant 0 : i32
    return %c0_i32, %c0_i32_0 : i32, i32
  }
  func.func @transform_2(%arg0: i32) -> (i32, i32) {
    %c0_i32 = arith.constant 0 : i32
    %c0_i32_0 = arith.constant 0 : i32
    %c0_i32_1 = arith.constant 0 : i32
    return %c0_i32, %c0_i32_0 : i32, i32
  }
  func.func @transform_3(%arg0: i32) -> (i32, i32) {
    %c0_i32 = arith.constant 0 : i32
    %c0_i32_0 = arith.constant 0 : i32
    return %arg0, %c0_i32 : i32, i32
  }
}

module attributes {stable_mosaic.version = 11 : i64} {
  func.func @_pool_lin_kernel(%arg0: i32, %arg1: memref<16x32xf32, #tpu.memory_space<vmem>>, %arg2: memref<1x16xi32, #tpu.memory_space<vmem>>, %arg3: memref<32x16xf32, #tpu.memory_space<vmem>>, %arg4: memref<1x16xf32, #tpu.memory_space<vmem>>, %arg5: memref<16x16xf32, #tpu.memory_space<vmem>>, %arg6: memref<2x16xf32, #tpu.memory_space<vmem>>, %arg7: memref<2x16xf32, #tpu.memory_space<vmem>>, %arg8: memref<2x1xf32, #tpu.memory_space<vmem>>) attributes {dimension_semantics = [#tpu.dimension_semantics<arbitrary>], iteration_bounds = array<i64: 1>, scalar_prefetch = 0 : i64, scratch_operands = 2 : i64, tpu.core_type = #tpu.core_type<tc>, window_params = [{transform_indices = @transform_0, window_bounds = array<i64: 16, 32>}, {transform_indices = @transform_1, window_bounds = array<i64: 1, 16>}, {pipeline_mode = #tpu.pipeline_mode<synchronous>, transform_indices = @transform_2, window_bounds = array<i64: 32, 16>}, {pipeline_mode = #tpu.pipeline_mode<synchronous>, transform_indices = @transform_3, window_bounds = array<i64: 1, 16>}, {transform_indices = @transform_4, window_bounds = array<i64: 16, 16>}, {pipeline_mode = #tpu.pipeline_mode<synchronous>, transform_indices = @transform_5, window_bounds = array<i64: 2, 16>}]} {
    %c0_i32 = arith.constant 0 : i32
    %0 = arith.cmpi eq, %arg0, %c0_i32 : i32
    %1 = arith.extui %0 : i1 to i32
    %c0_i32_0 = arith.constant 0 : i32
    %2 = arith.cmpi ne, %1, %c0_i32_0 : i32
    scf.if %2 {
      %cst_22 = arith.constant 0.000000e+00 : f32
      %28 = vector.broadcast %cst_22 : f32 to vector<2x16xf32>
      %c0_23 = arith.constant 0 : index
      %c0_24 = arith.constant 0 : index
      %29 = vector.load %arg7[%c0_23, %c0_24] : memref<2x16xf32, #tpu.memory_space<vmem>>, vector<2x16xf32>
      tpu.vector_store %arg7[%c0_23, %c0_24], %28 {strides = array<i32>} : memref<2x16xf32, #tpu.memory_space<vmem>>, vector<2x16xf32>,
      %cst_25 = arith.constant 0.000000e+00 : f32
      %30 = vector.broadcast %cst_25 : f32 to vector<2x1xf32>
      %c0_26 = arith.constant 0 : index
      %c0_27 = arith.constant 0 : index
      %31 = vector.load %arg8[%c0_26, %c0_27] : memref<2x1xf32, #tpu.memory_space<vmem>>, vector<2x1xf32>
      tpu.vector_store %arg8[%c0_26, %c0_27], %30 {strides = array<i32>} : memref<2x1xf32, #tpu.memory_space<vmem>>, vector<2x1xf32>,
    } else {
    }
    %c0 = arith.constant 0 : index
    %c0_1 = arith.constant 0 : index
    %3 = vector.load %arg1[%c0, %c0_1] : memref<16x32xf32, #tpu.memory_space<vmem>>, vector<16x32xf32>
    %c0_2 = arith.constant 0 : index
    %c0_3 = arith.constant 0 : index
    %4 = vector.load %arg3[%c0_2, %c0_3] : memref<32x16xf32, #tpu.memory_space<vmem>>, vector<32x16xf32>
    %cst = arith.constant dense<0.000000e+00> : vector<16x16xf32>
    %5 = tpu.matmul %3, %4, %cst {dimension_numbers = #tpu.dot_dimension_numbers<[1], [0], [0], [1], [0, 0, 1, 1], [], []>} : vector<16x32xf32>, vector<32x16xf32>, vector<16x16xf32> -> vector<16x16xf32>
    %c0_4 = arith.constant 0 : index
    %c0_5 = arith.constant 0 : index
    %6 = vector.load %arg4[%c0_4, %c0_5] : memref<1x16xf32, #tpu.memory_space<vmem>>, vector<1x16xf32>
    %7 = vector.broadcast %6 : vector<1x16xf32> to vector<16x16xf32>
    %8 = arith.addf %5, %7 : vector<16x16xf32>
    %c0_6 = arith.constant 0 : index
    %c0_7 = arith.constant 0 : index
    %9 = vector.load %arg5[%c0_6, %c0_7] : memref<16x16xf32, #tpu.memory_space<vmem>>, vector<16x16xf32>
    tpu.vector_store %arg5[%c0_6, %c0_7], %8 {strides = array<i32>} : memref<16x16xf32, #tpu.memory_space<vmem>>, vector<16x16xf32>,
    %10 = tpu.iota {dimensions = array<i32: 0>} : vector<2x16xi32>
    %c0_8 = arith.constant 0 : index
    %c0_9 = arith.constant 0 : index
    %11 = vector.load %arg2[%c0_8, %c0_9] : memref<1x16xi32, #tpu.memory_space<vmem>>, vector<1x16xi32>
    %12 = vector.broadcast %11 : vector<1x16xi32> to vector<2x16xi32>
    %13 = arith.cmpi eq, %10, %12 : vector<2x16xi32>
    %14 = arith.extui %13 : vector<2x16xi1> to vector<2x16xi32>
    %15 = arith.sitofp %14 : vector<2x16xi32> to vector<2x16xf32>
    %c0_10 = arith.constant 0 : index
    %c0_11 = arith.constant 0 : index
    %16 = vector.load %arg7[%c0_10, %c0_11] : memref<2x16xf32, #tpu.memory_space<vmem>>, vector<2x16xf32>
    %cst_12 = arith.constant dense<0.000000e+00> : vector<2x16xf32>
    %17 = tpu.matmul %15, %5, %cst_12 {dimension_numbers = #tpu.dot_dimension_numbers<[1], [0], [0], [1], [0, 0, 1, 1], [], []>} : vector<2x16xf32>, vector<16x16xf32>, vector<2x16xf32> -> vector<2x16xf32>
    %18 = arith.addf %16, %17 : vector<2x16xf32>
    %c0_13 = arith.constant 0 : index
    %c0_14 = arith.constant 0 : index
    %19 = vector.load %arg7[%c0_13, %c0_14] : memref<2x16xf32, #tpu.memory_space<vmem>>, vector<2x16xf32>
    tpu.vector_store %arg7[%c0_13, %c0_14], %18 {strides = array<i32>} : memref<2x16xf32, #tpu.memory_space<vmem>>, vector<2x16xf32>,
    %c0_15 = arith.constant 0 : index
    %c0_16 = arith.constant 0 : index
    %20 = vector.load %arg8[%c0_15, %c0_16] : memref<2x1xf32, #tpu.memory_space<vmem>>, vector<2x1xf32>
    %cst_17 = arith.constant dense<0.000000e+00> : vector<2xf32>
    %21 = vector.multi_reduction <add>, %15, %cst_17 [1] : vector<2x16xf32> to vector<2xf32>
    %22 = vector.shape_cast %21 : vector<2xf32> to vector<2x1xf32>
    %23 = arith.addf %20, %22 : vector<2x1xf32>
    %c0_18 = arith.constant 0 : index
    %c0_19 = arith.constant 0 : index
    %24 = vector.load %arg8[%c0_18, %c0_19] : memref<2x1xf32, #tpu.memory_space<vmem>>, vector<2x1xf32>
    tpu.vector_store %arg8[%c0_18, %c0_19], %23 {strides = array<i32>} : memref<2x1xf32, #tpu.memory_space<vmem>>, vector<2x1xf32>,
    %c0_i32_20 = arith.constant 0 : i32
    %25 = arith.cmpi eq, %arg0, %c0_i32_20 : i32
    %26 = arith.extui %25 : i1 to i32
    %c0_i32_21 = arith.constant 0 : i32
    %27 = arith.cmpi ne, %26, %c0_i32_21 : i32
    scf.if %27 {
      %c0_22 = arith.constant 0 : index
      %c0_23 = arith.constant 0 : index
      %28 = vector.load %arg8[%c0_22, %c0_23] : memref<2x1xf32, #tpu.memory_space<vmem>>, vector<2x1xf32>
      %cst_24 = arith.constant 1.000000e+00 : f32
      %29 = vector.broadcast %cst_24 : f32 to vector<2x1xf32>
      %30 = arith.maximumf %28, %29 : vector<2x1xf32>
      %31 = tpu.reciprocal %30 {approx = true} : vector<2x1xf32> -> vector<2x1xf32>
      %c0_25 = arith.constant 0 : index
      %c0_26 = arith.constant 0 : index
      %32 = vector.load %arg7[%c0_25, %c0_26] : memref<2x16xf32, #tpu.memory_space<vmem>>, vector<2x16xf32>
      %33 = vector.broadcast %31 : vector<2x1xf32> to vector<2x16xf32>
      %34 = arith.mulf %32, %33 : vector<2x16xf32>
      %c0_27 = arith.constant 0 : index
      %c0_28 = arith.constant 0 : index
      %35 = vector.load %arg4[%c0_27, %c0_28] : memref<1x16xf32, #tpu.memory_space<vmem>>, vector<1x16xf32>
      %36 = vector.broadcast %35 : vector<1x16xf32> to vector<2x16xf32>
      %37 = arith.addf %34, %36 : vector<2x16xf32>
      %c0_29 = arith.constant 0 : index
      %c0_30 = arith.constant 0 : index
      %38 = vector.load %arg6[%c0_29, %c0_30] : memref<2x16xf32, #tpu.memory_space<vmem>>, vector<2x16xf32>
      tpu.vector_store %arg6[%c0_29, %c0_30], %37 {strides = array<i32>} : memref<2x16xf32, #tpu.memory_space<vmem>>, vector<2x16xf32>,
    } else {
    }
    return
  }
  func.func @transform_0(%arg0: i32) -> (i32, i32) {
    %c0_i32 = arith.constant 0 : i32
    %c0_i32_0 = arith.constant 0 : i32
    return %arg0, %c0_i32 : i32, i32
  }
  func.func @transform_1(%arg0: i32) -> (i32, i32) {
    %c0_i32 = arith.constant 0 : i32
    %c0_i32_0 = arith.constant 0 : i32
    return %c0_i32, %arg0 : i32, i32
  }
  func.func @transform_2(%arg0: i32) -> (i32, i32) {
    %c0_i32 = arith.constant 0 : i32
    %c0_i32_0 = arith.constant 0 : i32
    %c0_i32_1 = arith.constant 0 : i32
    return %c0_i32, %c0_i32_0 : i32, i32
  }
  func.func @transform_3(%arg0: i32) -> (i32, i32) {
    %c0_i32 = arith.constant 0 : i32
    %c0_i32_0 = arith.constant 0 : i32
    %c0_i32_1 = arith.constant 0 : i32
    return %c0_i32, %c0_i32_0 : i32, i32
  }
  func.func @transform_4(%arg0: i32) -> (i32, i32) {
    %c0_i32 = arith.constant 0 : i32
    %c0_i32_0 = arith.constant 0 : i32
    return %arg0, %c0_i32 : i32, i32
  }
  func.func @transform_5(%arg0: i32) -> (i32, i32) {
    %c0_i32 = arith.constant 0 : i32
    %c0_i32_0 = arith.constant 0 : i32
    %c0_i32_1 = arith.constant 0 : i32
    return %c0_i32, %c0_i32_0 : i32, i32
  }
}

module attributes {stable_mosaic.version = 11 : i64} {
  func.func @kernel(%arg0: i32, %arg1: memref<1x1xf32, #tpu.memory_space<smem>>, %arg2: memref<16x32xf32, #tpu.memory_space<vmem>>, %arg3: memref<16x32xf32, #tpu.memory_space<vmem>>, %arg4: memref<128x1xi32, #tpu.memory_space<vmem>>, %arg5: memref<1x128xi32, #tpu.memory_space<vmem>>, %arg6: memref<128x32xf32, #tpu.memory_space<vmem>>, %arg7: memref<32x64xf32, #tpu.memory_space<vmem>>, %arg8: memref<1x64xf32, #tpu.memory_space<vmem>>, %arg9: memref<1x64xf32, #tpu.memory_space<vmem>>, %arg10: memref<1x64xf32, #tpu.memory_space<vmem>>, %arg11: memref<64x32xf32, #tpu.memory_space<vmem>>, %arg12: memref<1x32xf32, #tpu.memory_space<vmem>>, %arg13: memref<16x32xf32, #tpu.memory_space<vmem>>, %arg14: memref<1x32xf32, #tpu.memory_space<vmem>>, %arg15: memref<16x32xf32, #tpu.memory_space<vmem>>, %arg16: memref<16x32xf32, #tpu.memory_space<vmem>>) attributes {dimension_semantics = [#tpu.dimension_semantics<arbitrary>], iteration_bounds = array<i64: 1>, scalar_prefetch = 0 : i64, scratch_operands = 3 : i64, tpu.core_type = #tpu.core_type<tc>, window_params = [{transform_indices = @transform_0, window_bounds = array<i64: 1, 1>}, {pipeline_mode = #tpu.pipeline_mode<synchronous>, transform_indices = @transform_1, window_bounds = array<i64: 16, 32>}, {pipeline_mode = #tpu.pipeline_mode<synchronous>, transform_indices = @transform_2, window_bounds = array<i64: 16, 32>}, {transform_indices = @transform_3, window_bounds = array<i64: 128, 1>}, {transform_indices = @transform_4, window_bounds = array<i64: 1, 128>}, {transform_indices = @transform_5, window_bounds = array<i64: 128, 32>}, {pipeline_mode = #tpu.pipeline_mode<synchronous>, transform_indices = @transform_6, window_bounds = array<i64: 32, 64>}, {pipeline_mode = #tpu.pipeline_mode<synchronous>, transform_indices = @transform_7, window_bounds = array<i64: 1, 64>}, {pipeline_mode = #tpu.pipeline_mode<synchronous>, transform_indices = @transform_8, window_bounds = array<i64: 1, 64>}, {pipeline_mode = #tpu.pipeline_mode<synchronous>, transform_indices = @transform_9, window_bounds = array<i64: 1, 64>}, {pipeline_mode = #tpu.pipeline_mode<synchronous>, transform_indices = @transform_10, window_bounds = array<i64: 64, 32>}, {pipeline_mode = #tpu.pipeline_mode<synchronous>, transform_indices = @transform_11, window_bounds = array<i64: 1, 32>}, {pipeline_mode = #tpu.pipeline_mode<synchronous>, transform_indices = @transform_12, window_bounds = array<i64: 16, 32>}]} {
    %c0_i32 = arith.constant 0 : i32
    %0 = arith.cmpi eq, %arg0, %c0_i32 : i32
    %1 = arith.extui %0 : i1 to i32
    %c0_i32_0 = arith.constant 0 : i32
    %2 = arith.cmpi ne, %1, %c0_i32_0 : i32
    scf.if %2 {
      %cst_31 = arith.constant -1.000000e+30 : f32
      %53 = vector.broadcast %cst_31 : f32 to vector<1x32xf32>
      %c0_32 = arith.constant 0 : index
      %c0_33 = arith.constant 0 : index
      %54 = vector.load %arg14[%c0_32, %c0_33] : memref<1x32xf32, #tpu.memory_space<vmem>>, vector<1x32xf32>
      tpu.vector_store %arg14[%c0_32, %c0_33], %53 {strides = array<i32>} : memref<1x32xf32, #tpu.memory_space<vmem>>, vector<1x32xf32>,
      %cst_34 = arith.constant 0.000000e+00 : f32
      %55 = vector.broadcast %cst_34 : f32 to vector<16x32xf32>
      %c0_35 = arith.constant 0 : index
      %c0_36 = arith.constant 0 : index
      %56 = vector.load %arg15[%c0_35, %c0_36] : memref<16x32xf32, #tpu.memory_space<vmem>>, vector<16x32xf32>
      tpu.vector_store %arg15[%c0_35, %c0_36], %55 {strides = array<i32>} : memref<16x32xf32, #tpu.memory_space<vmem>>, vector<16x32xf32>,
      %cst_37 = arith.constant 0.000000e+00 : f32
      %57 = vector.broadcast %cst_37 : f32 to vector<16x32xf32>
      %c0_38 = arith.constant 0 : index
      %c0_39 = arith.constant 0 : index
      %58 = vector.load %arg16[%c0_38, %c0_39] : memref<16x32xf32, #tpu.memory_space<vmem>>, vector<16x32xf32>
      tpu.vector_store %arg16[%c0_38, %c0_39], %57 {strides = array<i32>} : memref<16x32xf32, #tpu.memory_space<vmem>>, vector<16x32xf32>,
    } else {
    }
    %c0 = arith.constant 0 : index
    %c0_1 = arith.constant 0 : index
    %3 = memref.load %arg1[%c0, %c0_1] : memref<1x1xf32, #tpu.memory_space<smem>>
    %c0_2 = arith.constant 0 : index
    %c0_3 = arith.constant 0 : index
    %4 = vector.load %arg4[%c0_2, %c0_3] : memref<128x1xi32, #tpu.memory_space<vmem>>, vector<128x1xi32>
    %c0_4 = arith.constant 0 : index
    %c0_5 = arith.constant 0 : index
    %5 = vector.load %arg5[%c0_4, %c0_5] : memref<1x128xi32, #tpu.memory_space<vmem>>, vector<1x128xi32>
    %6 = tpu.iota {dimensions = array<i32: 1>} : vector<128x16xi32>
    %7 = vector.broadcast %4 : vector<128x1xi32> to vector<128x16xi32>
    %8 = arith.cmpi eq, %6, %7 : vector<128x16xi32>
    %9 = arith.extui %8 : vector<128x16xi1> to vector<128x16xi32>
    %10 = arith.sitofp %9 : vector<128x16xi32> to vector<128x16xf32>
    %c0_6 = arith.constant 0 : index
    %c0_7 = arith.constant 0 : index
    %11 = vector.load %arg2[%c0_6, %c0_7] : memref<16x32xf32, #tpu.memory_space<vmem>>, vector<16x32xf32>
    %cst = arith.constant dense<0.000000e+00> : vector<128x32xf32>
    %12 = tpu.matmul %10, %11, %cst {dimension_numbers = #tpu.dot_dimension_numbers<[1], [0], [0], [1], [0, 0, 1, 1], [], []>} : vector<128x16xf32>, vector<16x32xf32>, vector<128x32xf32> -> vector<128x32xf32>
    %c0_8 = arith.constant 0 : index
    %c0_9 = arith.constant 0 : index
    %13 = vector.load %arg6[%c0_8, %c0_9] : memref<128x32xf32, #tpu.memory_space<vmem>>, vector<128x32xf32>
    %14 = arith.addf %12, %13 : vector<128x32xf32>
    %cst_10 = arith.constant 0.000000e+00 : f32
    %15 = vector.broadcast %cst_10 : f32 to vector<128x32xf32>
    %16 = arith.maximumf %14, %15 : vector<128x32xf32>
    %cst_11 = arith.constant 1.000000e-07 : f32
    %17 = vector.broadcast %cst_11 : f32 to vector<128x32xf32>
    %18 = arith.addf %16, %17 : vector<128x32xf32>
    %19 = vector.broadcast %3 : f32 to vector<128x32xf32>
    %20 = arith.mulf %18, %19 : vector<128x32xf32>
    %cst_12 = arith.constant dense<0xFF800000> : vector<32xf32>
    %21 = vector.multi_reduction <maximumf>, %20, %cst_12 [0] : vector<128x32xf32> to vector<32xf32>
    %22 = vector.shape_cast %21 : vector<32xf32> to vector<1x32xf32>
    %c0_13 = arith.constant 0 : index
    %c0_14 = arith.constant 0 : index
    %23 = vector.load %arg14[%c0_13, %c0_14] : memref<1x32xf32, #tpu.memory_space<vmem>>, vector<1x32xf32>
    %24 = arith.maximumf %23, %22 : vector<1x32xf32>
    %c0_15 = arith.constant 0 : index
    %c0_16 = arith.constant 0 : index
    %25 = vector.load %arg14[%c0_15, %c0_16] : memref<1x32xf32, #tpu.memory_space<vmem>>, vector<1x32xf32>
    %26 = arith.subf %25, %24 : vector<1x32xf32>
    %27 = math.exp %26 : vector<1x32xf32>
    %28 = vector.broadcast %24 : vector<1x32xf32> to vector<128x32xf32>
    %29 = arith.subf %20, %28 : vector<128x32xf32>
    %30 = math.exp %29 : vector<128x32xf32>
    %31 = tpu.iota {dimensions = array<i32: 0>} : vector<16x128xi32>
    %32 = vector.broadcast %5 : vector<1x128xi32> to vector<16x128xi32>
    %33 = arith.cmpi eq, %31, %32 : vector<16x128xi32>
    %34 = arith.extui %33 : vector<16x128xi1> to vector<16x128xi32>
    %35 = arith.sitofp %34 : vector<16x128xi32> to vector<16x128xf32>
    %c0_17 = arith.constant 0 : index
    %c0_18 = arith.constant 0 : index
    %36 = vector.load %arg15[%c0_17, %c0_18] : memref<16x32xf32, #tpu.memory_space<vmem>>, vector<16x32xf32>
    %37 = vector.broadcast %27 : vector<1x32xf32> to vector<16x32xf32>
    %38 = arith.mulf %36, %37 : vector<16x32xf32>
    %cst_19 = arith.constant dense<0.000000e+00> : vector<16x32xf32>
    %39 = tpu.matmul %35, %30, %cst_19 {dimension_numbers = #tpu.dot_dimension_numbers<[1], [0], [0], [1], [0, 0, 1, 1], [], []>} : vector<16x128xf32>, vector<128x32xf32>, vector<16x32xf32> -> vector<16x32xf32>
    %40 = arith.addf %38, %39 : vector<16x32xf32>
    %c0_20 = arith.constant 0 : index
    %c0_21 = arith.constant 0 : index
    %41 = vector.load %arg15[%c0_20, %c0_21] : memref<16x32xf32, #tpu.memory_space<vmem>>, vector<16x32xf32>
    tpu.vector_store %arg15[%c0_20, %c0_21], %40 {strides = array<i32>} : memref<16x32xf32, #tpu.memory_space<vmem>>, vector<16x32xf32>,
    %c0_22 = arith.constant 0 : index
    %c0_23 = arith.constant 0 : index
    %42 = vector.load %arg16[%c0_22, %c0_23] : memref<16x32xf32, #tpu.memory_space<vmem>>, vector<16x32xf32>
    %43 = vector.broadcast %27 : vector<1x32xf32> to vector<16x32xf32>
    %44 = arith.mulf %42, %43 : vector<16x32xf32>
    %45 = arith.mulf %30, %18 : vector<128x32xf32>
    %cst_24 = arith.constant dense<0.000000e+00> : vector<16x32xf32>
    %46 = tpu.matmul %35, %45, %cst_24 {dimension_numbers = #tpu.dot_dimension_numbers<[1], [0], [0], [1], [0, 0, 1, 1], [], []>} : vector<16x128xf32>, vector<128x32xf32>, vector<16x32xf32> -> vector<16x32xf32>
    %47 = arith.addf %44, %46 : vector<16x32xf32>
    %c0_25 = arith.constant 0 : index
    %c0_26 = arith.constant 0 : index
    %48 = vector.load %arg16[%c0_25, %c0_26] : memref<16x32xf32, #tpu.memory_space<vmem>>, vector<16x32xf32>
    tpu.vector_store %arg16[%c0_25, %c0_26], %47 {strides = array<i32>} : memref<16x32xf32, #tpu.memory_space<vmem>>, vector<16x32xf32>,
    %c0_27 = arith.constant 0 : index
    %c0_28 = arith.constant 0 : index
    %49 = vector.load %arg14[%c0_27, %c0_28] : memref<1x32xf32, #tpu.memory_space<vmem>>, vector<1x32xf32>
    tpu.vector_store %arg14[%c0_27, %c0_28], %24 {strides = array<i32>} : memref<1x32xf32, #tpu.memory_space<vmem>>, vector<1x32xf32>,
    %c0_i32_29 = arith.constant 0 : i32
    %50 = arith.cmpi eq, %arg0, %c0_i32_29 : i32
    %51 = arith.extui %50 : i1 to i32
    %c0_i32_30 = arith.constant 0 : i32
    %52 = arith.cmpi ne, %51, %c0_i32_30 : i32
    scf.if %52 {
      %c0_31 = arith.constant 0 : index
      %c0_32 = arith.constant 0 : index
      %53 = vector.load %arg15[%c0_31, %c0_32] : memref<16x32xf32, #tpu.memory_space<vmem>>, vector<16x32xf32>
      %cst_33 = arith.constant 0.000000e+00 : f32
      %54 = vector.broadcast %cst_33 : f32 to vector<16x32xf32>
      %55 = arith.cmpf ogt, %53, %54 : vector<16x32xf32>
      %cst_34 = arith.constant 1.000000e+00 : f32
      %56 = vector.broadcast %cst_34 : f32 to vector<16x32xf32>
      %57 = arith.select %55, %53, %56 : vector<16x32xi1>, vector<16x32xf32>
      %c0_35 = arith.constant 0 : index
      %c0_36 = arith.constant 0 : index
      %58 = vector.load %arg16[%c0_35, %c0_36] : memref<16x32xf32, #tpu.memory_space<vmem>>, vector<16x32xf32>
      %59 = tpu.reciprocal %57 {approx = true} : vector<16x32xf32> -> vector<16x32xf32>
      %60 = arith.mulf %58, %59 : vector<16x32xf32>
      %c0_37 = arith.constant 0 : index
      %c0_38 = arith.constant 0 : index
      %61 = vector.load %arg2[%c0_37, %c0_38] : memref<16x32xf32, #tpu.memory_space<vmem>>, vector<16x32xf32>
      %62 = arith.addf %60, %61 : vector<16x32xf32>
      %c0_39 = arith.constant 0 : index
      %c0_40 = arith.constant 0 : index
      %63 = vector.load %arg7[%c0_39, %c0_40] : memref<32x64xf32, #tpu.memory_space<vmem>>, vector<32x64xf32>
      %cst_41 = arith.constant dense<0.000000e+00> : vector<16x64xf32>
      %64 = tpu.matmul %62, %63, %cst_41 {dimension_numbers = #tpu.dot_dimension_numbers<[1], [0], [0], [1], [0, 0, 1, 1], [], []>} : vector<16x32xf32>, vector<32x64xf32>, vector<16x64xf32> -> vector<16x64xf32>
      %c0_42 = arith.constant 0 : index
      %c0_43 = arith.constant 0 : index
      %65 = vector.load %arg8[%c0_42, %c0_43] : memref<1x64xf32, #tpu.memory_space<vmem>>, vector<1x64xf32>
      %66 = vector.broadcast %65 : vector<1x64xf32> to vector<16x64xf32>
      %67 = arith.addf %64, %66 : vector<16x64xf32>
      %cst_44 = arith.constant dense<0.000000e+00> : vector<16xf32>
      %68 = vector.multi_reduction <add>, %67, %cst_44 [1] : vector<16x64xf32> to vector<16xf32>
      %69 = vector.shape_cast %68 : vector<16xf32> to vector<16x1xf32>
      %cst_45 = arith.constant 6.400000e+01 : f32
      %70 = vector.broadcast %cst_45 : f32 to vector<16x1xf32>
      %71 = arith.divf %69, %70 : vector<16x1xf32>
      %72 = vector.broadcast %71 : vector<16x1xf32> to vector<16x64xf32>
      %73 = arith.subf %67, %72 : vector<16x64xf32>
      %74 = arith.mulf %73, %73 : vector<16x64xf32>
      %cst_46 = arith.constant dense<0.000000e+00> : vector<16xf32>
      %75 = vector.multi_reduction <add>, %74, %cst_46 [1] : vector<16x64xf32> to vector<16xf32>
      %76 = vector.shape_cast %75 : vector<16xf32> to vector<16x1xf32>
      %cst_47 = arith.constant 6.400000e+01 : f32
      %77 = vector.broadcast %cst_47 : f32 to vector<16x1xf32>
      %78 = arith.divf %76, %77 : vector<16x1xf32>
      %79 = vector.broadcast %71 : vector<16x1xf32> to vector<16x64xf32>
      %80 = arith.subf %67, %79 : vector<16x64xf32>
      %cst_48 = arith.constant 9.99999974E-6 : f32
      %81 = vector.broadcast %cst_48 : f32 to vector<16x1xf32>
      %82 = arith.addf %78, %81 : vector<16x1xf32>
      %83 = math.rsqrt %82 : vector<16x1xf32>
      %84 = vector.broadcast %83 : vector<16x1xf32> to vector<16x64xf32>
      %85 = arith.mulf %80, %84 : vector<16x64xf32>
      %c0_49 = arith.constant 0 : index
      %c0_50 = arith.constant 0 : index
      %86 = vector.load %arg9[%c0_49, %c0_50] : memref<1x64xf32, #tpu.memory_space<vmem>>, vector<1x64xf32>
      %87 = vector.broadcast %86 : vector<1x64xf32> to vector<16x64xf32>
      %88 = arith.mulf %85, %87 : vector<16x64xf32>
      %c0_51 = arith.constant 0 : index
      %c0_52 = arith.constant 0 : index
      %89 = vector.load %arg10[%c0_51, %c0_52] : memref<1x64xf32, #tpu.memory_space<vmem>>, vector<1x64xf32>
      %90 = vector.broadcast %89 : vector<1x64xf32> to vector<16x64xf32>
      %91 = arith.addf %88, %90 : vector<16x64xf32>
      %cst_53 = arith.constant 0.000000e+00 : f32
      %92 = vector.broadcast %cst_53 : f32 to vector<16x64xf32>
      %93 = arith.maximumf %91, %92 : vector<16x64xf32>
      %c0_54 = arith.constant 0 : index
      %c0_55 = arith.constant 0 : index
      %94 = vector.load %arg11[%c0_54, %c0_55] : memref<64x32xf32, #tpu.memory_space<vmem>>, vector<64x32xf32>
      %cst_56 = arith.constant dense<0.000000e+00> : vector<16x32xf32>
      %95 = tpu.matmul %93, %94, %cst_56 {dimension_numbers = #tpu.dot_dimension_numbers<[1], [0], [0], [1], [0, 0, 1, 1], [], []>} : vector<16x64xf32>, vector<64x32xf32>, vector<16x32xf32> -> vector<16x32xf32>
      %c0_57 = arith.constant 0 : index
      %c0_58 = arith.constant 0 : index
      %96 = vector.load %arg12[%c0_57, %c0_58] : memref<1x32xf32, #tpu.memory_space<vmem>>, vector<1x32xf32>
      %97 = vector.broadcast %96 : vector<1x32xf32> to vector<16x32xf32>
      %98 = arith.addf %95, %97 : vector<16x32xf32>
      %c0_59 = arith.constant 0 : index
      %c0_60 = arith.constant 0 : index
      %99 = vector.load %arg13[%c0_59, %c0_60] : memref<16x32xf32, #tpu.memory_space<vmem>>, vector<16x32xf32>
      tpu.vector_store %arg13[%c0_59, %c0_60], %98 {strides = array<i32>} : memref<16x32xf32, #tpu.memory_space<vmem>>, vector<16x32xf32>,
    } else {
    }
    return
  }
  func.func @transform_0(%arg0: i32) -> (i32, i32) {
    %c0_i32 = arith.constant 0 : i32
    %c0_i32_0 = arith.constant 0 : i32
    %c0_i32_1 = arith.constant 0 : i32
    return %c0_i32, %c0_i32_0 : i32, i32
  }
  func.func @transform_1(%arg0: i32) -> (i32, i32) {
    %c0_i32 = arith.constant 0 : i32
    %c0_i32_0 = arith.constant 0 : i32
    %c0_i32_1 = arith.constant 0 : i32
    return %c0_i32, %c0_i32_0 : i32, i32
  }
  func.func @transform_2(%arg0: i32) -> (i32, i32) {
    %c0_i32 = arith.constant 0 : i32
    %c0_i32_0 = arith.constant 0 : i32
    %c0_i32_1 = arith.constant 0 : i32
    return %c0_i32, %c0_i32_0 : i32, i32
  }
  func.func @transform_3(%arg0: i32) -> (i32, i32) {
    %c0_i32 = arith.constant 0 : i32
    %c0_i32_0 = arith.constant 0 : i32
    return %arg0, %c0_i32 : i32, i32
  }
  func.func @transform_4(%arg0: i32) -> (i32, i32) {
    %c0_i32 = arith.constant 0 : i32
    %c0_i32_0 = arith.constant 0 : i32
    return %c0_i32, %arg0 : i32, i32
  }
  func.func @transform_5(%arg0: i32) -> (i32, i32) {
    %c0_i32 = arith.constant 0 : i32
    %c0_i32_0 = arith.constant 0 : i32
    return %arg0, %c0_i32 : i32, i32
  }
  func.func @transform_6(%arg0: i32) -> (i32, i32) {
    %c0_i32 = arith.constant 0 : i32
    %c0_i32_0 = arith.constant 0 : i32
    %c0_i32_1 = arith.constant 0 : i32
    return %c0_i32, %c0_i32_0 : i32, i32
  }
  func.func @transform_7(%arg0: i32) -> (i32, i32) {
    %c0_i32 = arith.constant 0 : i32
    %c0_i32_0 = arith.constant 0 : i32
    %c0_i32_1 = arith.constant 0 : i32
    return %c0_i32, %c0_i32_0 : i32, i32
  }
  func.func @transform_8(%arg0: i32) -> (i32, i32) {
    %c0_i32 = arith.constant 0 : i32
    %c0_i32_0 = arith.constant 0 : i32
    %c0_i32_1 = arith.constant 0 : i32
    return %c0_i32, %c0_i32_0 : i32, i32
  }
  func.func @transform_9(%arg0: i32) -> (i32, i32) {
    %c0_i32 = arith.constant 0 : i32
    %c0_i32_0 = arith.constant 0 : i32
    %c0_i32_1 = arith.constant 0 : i32
    return %c0_i32, %c0_i32_0 : i32, i32
  }
  func.func @transform_10(%arg0: i32) -> (i32, i32) {
    %c0_i32 = arith.constant 0 : i32
    %c0_i32_0 = arith.constant 0 : i32
    %c0_i32_1 = arith.constant 0 : i32
    return %c0_i32, %c0_i32_0 : i32, i32
  }
  func.func @transform_11(%arg0: i32) -> (i32, i32) {
    %c0_i32 = arith.constant 0 : i32
    %c0_i32_0 = arith.constant 0 : i32
    %c0_i32_1 = arith.constant 0 : i32
    return %c0_i32, %c0_i32_0 : i32, i32
  }
  func.func @transform_12(%arg0: i32) -> (i32, i32) {
    %c0_i32 = arith.constant 0 : i32
    %c0_i32_0 = arith.constant 0 : i32
    %c0_i32_1 = arith.constant 0 : i32
    return %c0_i32, %c0_i32_0 : i32, i32
  }
}

module attributes {stable_mosaic.version = 11 : i64} {
  func.func @kernel(%arg0: i32, %arg1: memref<1x1xf32, #tpu.memory_space<smem>>, %arg2: memref<16x32xf32, #tpu.memory_space<vmem>>, %arg3: memref<16x32xf32, #tpu.memory_space<vmem>>, %arg4: memref<128x1xi32, #tpu.memory_space<vmem>>, %arg5: memref<1x128xi32, #tpu.memory_space<vmem>>, %arg6: memref<128x32xf32, #tpu.memory_space<vmem>>, %arg7: memref<32x64xf32, #tpu.memory_space<vmem>>, %arg8: memref<1x64xf32, #tpu.memory_space<vmem>>, %arg9: memref<1x64xf32, #tpu.memory_space<vmem>>, %arg10: memref<1x64xf32, #tpu.memory_space<vmem>>, %arg11: memref<64x32xf32, #tpu.memory_space<vmem>>, %arg12: memref<1x32xf32, #tpu.memory_space<vmem>>, %arg13: memref<16x32xf32, #tpu.memory_space<vmem>>, %arg14: memref<1x32xf32, #tpu.memory_space<vmem>>, %arg15: memref<16x32xf32, #tpu.memory_space<vmem>>, %arg16: memref<16x32xf32, #tpu.memory_space<vmem>>) attributes {dimension_semantics = [#tpu.dimension_semantics<arbitrary>], iteration_bounds = array<i64: 1>, scalar_prefetch = 0 : i64, scratch_operands = 3 : i64, tpu.core_type = #tpu.core_type<tc>, window_params = [{transform_indices = @transform_0, window_bounds = array<i64: 1, 1>}, {pipeline_mode = #tpu.pipeline_mode<synchronous>, transform_indices = @transform_1, window_bounds = array<i64: 16, 32>}, {pipeline_mode = #tpu.pipeline_mode<synchronous>, transform_indices = @transform_2, window_bounds = array<i64: 16, 32>}, {transform_indices = @transform_3, window_bounds = array<i64: 128, 1>}, {transform_indices = @transform_4, window_bounds = array<i64: 1, 128>}, {transform_indices = @transform_5, window_bounds = array<i64: 128, 32>}, {pipeline_mode = #tpu.pipeline_mode<synchronous>, transform_indices = @transform_6, window_bounds = array<i64: 32, 64>}, {pipeline_mode = #tpu.pipeline_mode<synchronous>, transform_indices = @transform_7, window_bounds = array<i64: 1, 64>}, {pipeline_mode = #tpu.pipeline_mode<synchronous>, transform_indices = @transform_8, window_bounds = array<i64: 1, 64>}, {pipeline_mode = #tpu.pipeline_mode<synchronous>, transform_indices = @transform_9, window_bounds = array<i64: 1, 64>}, {pipeline_mode = #tpu.pipeline_mode<synchronous>, transform_indices = @transform_10, window_bounds = array<i64: 64, 32>}, {pipeline_mode = #tpu.pipeline_mode<synchronous>, transform_indices = @transform_11, window_bounds = array<i64: 1, 32>}, {pipeline_mode = #tpu.pipeline_mode<synchronous>, transform_indices = @transform_12, window_bounds = array<i64: 16, 32>}]} {
    %c0_i32 = arith.constant 0 : i32
    %0 = arith.cmpi eq, %arg0, %c0_i32 : i32
    %1 = arith.extui %0 : i1 to i32
    %c0_i32_0 = arith.constant 0 : i32
    %2 = arith.cmpi ne, %1, %c0_i32_0 : i32
    scf.if %2 {
      %cst_31 = arith.constant -1.000000e+30 : f32
      %53 = vector.broadcast %cst_31 : f32 to vector<1x32xf32>
      %c0_32 = arith.constant 0 : index
      %c0_33 = arith.constant 0 : index
      %54 = vector.load %arg14[%c0_32, %c0_33] : memref<1x32xf32, #tpu.memory_space<vmem>>, vector<1x32xf32>
      tpu.vector_store %arg14[%c0_32, %c0_33], %53 {strides = array<i32>} : memref<1x32xf32, #tpu.memory_space<vmem>>, vector<1x32xf32>,
      %cst_34 = arith.constant 0.000000e+00 : f32
      %55 = vector.broadcast %cst_34 : f32 to vector<16x32xf32>
      %c0_35 = arith.constant 0 : index
      %c0_36 = arith.constant 0 : index
      %56 = vector.load %arg15[%c0_35, %c0_36] : memref<16x32xf32, #tpu.memory_space<vmem>>, vector<16x32xf32>
      tpu.vector_store %arg15[%c0_35, %c0_36], %55 {strides = array<i32>} : memref<16x32xf32, #tpu.memory_space<vmem>>, vector<16x32xf32>,
      %cst_37 = arith.constant 0.000000e+00 : f32
      %57 = vector.broadcast %cst_37 : f32 to vector<16x32xf32>
      %c0_38 = arith.constant 0 : index
      %c0_39 = arith.constant 0 : index
      %58 = vector.load %arg16[%c0_38, %c0_39] : memref<16x32xf32, #tpu.memory_space<vmem>>, vector<16x32xf32>
      tpu.vector_store %arg16[%c0_38, %c0_39], %57 {strides = array<i32>} : memref<16x32xf32, #tpu.memory_space<vmem>>, vector<16x32xf32>,
    } else {
    }
    %c0 = arith.constant 0 : index
    %c0_1 = arith.constant 0 : index
    %3 = memref.load %arg1[%c0, %c0_1] : memref<1x1xf32, #tpu.memory_space<smem>>
    %c0_2 = arith.constant 0 : index
    %c0_3 = arith.constant 0 : index
    %4 = vector.load %arg4[%c0_2, %c0_3] : memref<128x1xi32, #tpu.memory_space<vmem>>, vector<128x1xi32>
    %c0_4 = arith.constant 0 : index
    %c0_5 = arith.constant 0 : index
    %5 = vector.load %arg5[%c0_4, %c0_5] : memref<1x128xi32, #tpu.memory_space<vmem>>, vector<1x128xi32>
    %6 = tpu.iota {dimensions = array<i32: 1>} : vector<128x16xi32>
    %7 = vector.broadcast %4 : vector<128x1xi32> to vector<128x16xi32>
    %8 = arith.cmpi eq, %6, %7 : vector<128x16xi32>
    %9 = arith.extui %8 : vector<128x16xi1> to vector<128x16xi32>
    %10 = arith.sitofp %9 : vector<128x16xi32> to vector<128x16xf32>
    %c0_6 = arith.constant 0 : index
    %c0_7 = arith.constant 0 : index
    %11 = vector.load %arg2[%c0_6, %c0_7] : memref<16x32xf32, #tpu.memory_space<vmem>>, vector<16x32xf32>
    %cst = arith.constant dense<0.000000e+00> : vector<128x32xf32>
    %12 = tpu.matmul %10, %11, %cst {dimension_numbers = #tpu.dot_dimension_numbers<[1], [0], [0], [1], [0, 0, 1, 1], [], []>} : vector<128x16xf32>, vector<16x32xf32>, vector<128x32xf32> -> vector<128x32xf32>
    %c0_8 = arith.constant 0 : index
    %c0_9 = arith.constant 0 : index
    %13 = vector.load %arg6[%c0_8, %c0_9] : memref<128x32xf32, #tpu.memory_space<vmem>>, vector<128x32xf32>
    %14 = arith.addf %12, %13 : vector<128x32xf32>
    %cst_10 = arith.constant 0.000000e+00 : f32
    %15 = vector.broadcast %cst_10 : f32 to vector<128x32xf32>
    %16 = arith.maximumf %14, %15 : vector<128x32xf32>
    %cst_11 = arith.constant 1.000000e-07 : f32
    %17 = vector.broadcast %cst_11 : f32 to vector<128x32xf32>
    %18 = arith.addf %16, %17 : vector<128x32xf32>
    %19 = vector.broadcast %3 : f32 to vector<128x32xf32>
    %20 = arith.mulf %18, %19 : vector<128x32xf32>
    %cst_12 = arith.constant dense<0xFF800000> : vector<32xf32>
    %21 = vector.multi_reduction <maximumf>, %20, %cst_12 [0] : vector<128x32xf32> to vector<32xf32>
    %22 = vector.shape_cast %21 : vector<32xf32> to vector<1x32xf32>
    %c0_13 = arith.constant 0 : index
    %c0_14 = arith.constant 0 : index
    %23 = vector.load %arg14[%c0_13, %c0_14] : memref<1x32xf32, #tpu.memory_space<vmem>>, vector<1x32xf32>
    %24 = arith.maximumf %23, %22 : vector<1x32xf32>
    %c0_15 = arith.constant 0 : index
    %c0_16 = arith.constant 0 : index
    %25 = vector.load %arg14[%c0_15, %c0_16] : memref<1x32xf32, #tpu.memory_space<vmem>>, vector<1x32xf32>
    %26 = arith.subf %25, %24 : vector<1x32xf32>
    %27 = math.exp %26 : vector<1x32xf32>
    %28 = vector.broadcast %24 : vector<1x32xf32> to vector<128x32xf32>
    %29 = arith.subf %20, %28 : vector<128x32xf32>
    %30 = math.exp %29 : vector<128x32xf32>
    %31 = tpu.iota {dimensions = array<i32: 0>} : vector<16x128xi32>
    %32 = vector.broadcast %5 : vector<1x128xi32> to vector<16x128xi32>
    %33 = arith.cmpi eq, %31, %32 : vector<16x128xi32>
    %34 = arith.extui %33 : vector<16x128xi1> to vector<16x128xi32>
    %35 = arith.sitofp %34 : vector<16x128xi32> to vector<16x128xf32>
    %c0_17 = arith.constant 0 : index
    %c0_18 = arith.constant 0 : index
    %36 = vector.load %arg15[%c0_17, %c0_18] : memref<16x32xf32, #tpu.memory_space<vmem>>, vector<16x32xf32>
    %37 = vector.broadcast %27 : vector<1x32xf32> to vector<16x32xf32>
    %38 = arith.mulf %36, %37 : vector<16x32xf32>
    %cst_19 = arith.constant dense<0.000000e+00> : vector<16x32xf32>
    %39 = tpu.matmul %35, %30, %cst_19 {dimension_numbers = #tpu.dot_dimension_numbers<[1], [0], [0], [1], [0, 0, 1, 1], [], []>} : vector<16x128xf32>, vector<128x32xf32>, vector<16x32xf32> -> vector<16x32xf32>
    %40 = arith.addf %38, %39 : vector<16x32xf32>
    %c0_20 = arith.constant 0 : index
    %c0_21 = arith.constant 0 : index
    %41 = vector.load %arg15[%c0_20, %c0_21] : memref<16x32xf32, #tpu.memory_space<vmem>>, vector<16x32xf32>
    tpu.vector_store %arg15[%c0_20, %c0_21], %40 {strides = array<i32>} : memref<16x32xf32, #tpu.memory_space<vmem>>, vector<16x32xf32>,
    %c0_22 = arith.constant 0 : index
    %c0_23 = arith.constant 0 : index
    %42 = vector.load %arg16[%c0_22, %c0_23] : memref<16x32xf32, #tpu.memory_space<vmem>>, vector<16x32xf32>
    %43 = vector.broadcast %27 : vector<1x32xf32> to vector<16x32xf32>
    %44 = arith.mulf %42, %43 : vector<16x32xf32>
    %45 = arith.mulf %30, %18 : vector<128x32xf32>
    %cst_24 = arith.constant dense<0.000000e+00> : vector<16x32xf32>
    %46 = tpu.matmul %35, %45, %cst_24 {dimension_numbers = #tpu.dot_dimension_numbers<[1], [0], [0], [1], [0, 0, 1, 1], [], []>} : vector<16x128xf32>, vector<128x32xf32>, vector<16x32xf32> -> vector<16x32xf32>
    %47 = arith.addf %44, %46 : vector<16x32xf32>
    %c0_25 = arith.constant 0 : index
    %c0_26 = arith.constant 0 : index
    %48 = vector.load %arg16[%c0_25, %c0_26] : memref<16x32xf32, #tpu.memory_space<vmem>>, vector<16x32xf32>
    tpu.vector_store %arg16[%c0_25, %c0_26], %47 {strides = array<i32>} : memref<16x32xf32, #tpu.memory_space<vmem>>, vector<16x32xf32>,
    %c0_27 = arith.constant 0 : index
    %c0_28 = arith.constant 0 : index
    %49 = vector.load %arg14[%c0_27, %c0_28] : memref<1x32xf32, #tpu.memory_space<vmem>>, vector<1x32xf32>
    tpu.vector_store %arg14[%c0_27, %c0_28], %24 {strides = array<i32>} : memref<1x32xf32, #tpu.memory_space<vmem>>, vector<1x32xf32>,
    %c0_i32_29 = arith.constant 0 : i32
    %50 = arith.cmpi eq, %arg0, %c0_i32_29 : i32
    %51 = arith.extui %50 : i1 to i32
    %c0_i32_30 = arith.constant 0 : i32
    %52 = arith.cmpi ne, %51, %c0_i32_30 : i32
    scf.if %52 {
      %c0_31 = arith.constant 0 : index
      %c0_32 = arith.constant 0 : index
      %53 = vector.load %arg15[%c0_31, %c0_32] : memref<16x32xf32, #tpu.memory_space<vmem>>, vector<16x32xf32>
      %cst_33 = arith.constant 0.000000e+00 : f32
      %54 = vector.broadcast %cst_33 : f32 to vector<16x32xf32>
      %55 = arith.cmpf ogt, %53, %54 : vector<16x32xf32>
      %cst_34 = arith.constant 1.000000e+00 : f32
      %56 = vector.broadcast %cst_34 : f32 to vector<16x32xf32>
      %57 = arith.select %55, %53, %56 : vector<16x32xi1>, vector<16x32xf32>
      %c0_35 = arith.constant 0 : index
      %c0_36 = arith.constant 0 : index
      %58 = vector.load %arg16[%c0_35, %c0_36] : memref<16x32xf32, #tpu.memory_space<vmem>>, vector<16x32xf32>
      %59 = tpu.reciprocal %57 {approx = true} : vector<16x32xf32> -> vector<16x32xf32>
      %60 = arith.mulf %58, %59 : vector<16x32xf32>
      %c0_37 = arith.constant 0 : index
      %c0_38 = arith.constant 0 : index
      %61 = vector.load %arg2[%c0_37, %c0_38] : memref<16x32xf32, #tpu.memory_space<vmem>>, vector<16x32xf32>
      %62 = arith.addf %60, %61 : vector<16x32xf32>
      %c0_39 = arith.constant 0 : index
      %c0_40 = arith.constant 0 : index
      %63 = vector.load %arg7[%c0_39, %c0_40] : memref<32x64xf32, #tpu.memory_space<vmem>>, vector<32x64xf32>
      %cst_41 = arith.constant dense<0.000000e+00> : vector<16x64xf32>
      %64 = tpu.matmul %62, %63, %cst_41 {dimension_numbers = #tpu.dot_dimension_numbers<[1], [0], [0], [1], [0, 0, 1, 1], [], []>} : vector<16x32xf32>, vector<32x64xf32>, vector<16x64xf32> -> vector<16x64xf32>
      %c0_42 = arith.constant 0 : index
      %c0_43 = arith.constant 0 : index
      %65 = vector.load %arg8[%c0_42, %c0_43] : memref<1x64xf32, #tpu.memory_space<vmem>>, vector<1x64xf32>
      %66 = vector.broadcast %65 : vector<1x64xf32> to vector<16x64xf32>
      %67 = arith.addf %64, %66 : vector<16x64xf32>
      %cst_44 = arith.constant dense<0.000000e+00> : vector<16xf32>
      %68 = vector.multi_reduction <add>, %67, %cst_44 [1] : vector<16x64xf32> to vector<16xf32>
      %69 = vector.shape_cast %68 : vector<16xf32> to vector<16x1xf32>
      %cst_45 = arith.constant 6.400000e+01 : f32
      %70 = vector.broadcast %cst_45 : f32 to vector<16x1xf32>
      %71 = arith.divf %69, %70 : vector<16x1xf32>
      %72 = vector.broadcast %71 : vector<16x1xf32> to vector<16x64xf32>
      %73 = arith.subf %67, %72 : vector<16x64xf32>
      %74 = arith.mulf %73, %73 : vector<16x64xf32>
      %cst_46 = arith.constant dense<0.000000e+00> : vector<16xf32>
      %75 = vector.multi_reduction <add>, %74, %cst_46 [1] : vector<16x64xf32> to vector<16xf32>
      %76 = vector.shape_cast %75 : vector<16xf32> to vector<16x1xf32>
      %cst_47 = arith.constant 6.400000e+01 : f32
      %77 = vector.broadcast %cst_47 : f32 to vector<16x1xf32>
      %78 = arith.divf %76, %77 : vector<16x1xf32>
      %79 = vector.broadcast %71 : vector<16x1xf32> to vector<16x64xf32>
      %80 = arith.subf %67, %79 : vector<16x64xf32>
      %cst_48 = arith.constant 9.99999974E-6 : f32
      %81 = vector.broadcast %cst_48 : f32 to vector<16x1xf32>
      %82 = arith.addf %78, %81 : vector<16x1xf32>
      %83 = math.rsqrt %82 : vector<16x1xf32>
      %84 = vector.broadcast %83 : vector<16x1xf32> to vector<16x64xf32>
      %85 = arith.mulf %80, %84 : vector<16x64xf32>
      %c0_49 = arith.constant 0 : index
      %c0_50 = arith.constant 0 : index
      %86 = vector.load %arg9[%c0_49, %c0_50] : memref<1x64xf32, #tpu.memory_space<vmem>>, vector<1x64xf32>
      %87 = vector.broadcast %86 : vector<1x64xf32> to vector<16x64xf32>
      %88 = arith.mulf %85, %87 : vector<16x64xf32>
      %c0_51 = arith.constant 0 : index
      %c0_52 = arith.constant 0 : index
      %89 = vector.load %arg10[%c0_51, %c0_52] : memref<1x64xf32, #tpu.memory_space<vmem>>, vector<1x64xf32>
      %90 = vector.broadcast %89 : vector<1x64xf32> to vector<16x64xf32>
      %91 = arith.addf %88, %90 : vector<16x64xf32>
      %cst_53 = arith.constant 0.000000e+00 : f32
      %92 = vector.broadcast %cst_53 : f32 to vector<16x64xf32>
      %93 = arith.maximumf %91, %92 : vector<16x64xf32>
      %c0_54 = arith.constant 0 : index
      %c0_55 = arith.constant 0 : index
      %94 = vector.load %arg11[%c0_54, %c0_55] : memref<64x32xf32, #tpu.memory_space<vmem>>, vector<64x32xf32>
      %cst_56 = arith.constant dense<0.000000e+00> : vector<16x32xf32>
      %95 = tpu.matmul %93, %94, %cst_56 {dimension_numbers = #tpu.dot_dimension_numbers<[1], [0], [0], [1], [0, 0, 1, 1], [], []>} : vector<16x64xf32>, vector<64x32xf32>, vector<16x32xf32> -> vector<16x32xf32>
      %c0_57 = arith.constant 0 : index
      %c0_58 = arith.constant 0 : index
      %96 = vector.load %arg12[%c0_57, %c0_58] : memref<1x32xf32, #tpu.memory_space<vmem>>, vector<1x32xf32>
      %97 = vector.broadcast %96 : vector<1x32xf32> to vector<16x32xf32>
      %98 = arith.addf %95, %97 : vector<16x32xf32>
      %c0_59 = arith.constant 0 : index
      %c0_60 = arith.constant 0 : index
      %99 = vector.load %arg3[%c0_59, %c0_60] : memref<16x32xf32, #tpu.memory_space<vmem>>, vector<16x32xf32>
      %100 = arith.addf %99, %98 : vector<16x32xf32>
      %c0_61 = arith.constant 0 : index
      %c0_62 = arith.constant 0 : index
      %101 = vector.load %arg13[%c0_61, %c0_62] : memref<16x32xf32, #tpu.memory_space<vmem>>, vector<16x32xf32>
      tpu.vector_store %arg13[%c0_61, %c0_62], %100 {strides = array<i32>} : memref<16x32xf32, #tpu.memory_space<vmem>>, vector<16x32xf32>,
    } else {
    }
    return
  }
  func.func @transform_0(%arg0: i32) -> (i32, i32) {
    %c0_i32 = arith.constant 0 : i32
    %c0_i32_0 = arith.constant 0 : i32
    %c0_i32_1 = arith.constant 0 : i32
    return %c0_i32, %c0_i32_0 : i32, i32
  }
  func.func @transform_1(%arg0: i32) -> (i32, i32) {
    %c0_i32 = arith.constant 0 : i32
    %c0_i32_0 = arith.constant 0 : i32
    %c0_i32_1 = arith.constant 0 : i32
    return %c0_i32, %c0_i32_0 : i32, i32
  }
  func.func @transform_2(%arg0: i32) -> (i32, i32) {
    %c0_i32 = arith.constant 0 : i32
    %c0_i32_0 = arith.constant 0 : i32
    %c0_i32_1 = arith.constant 0 : i32
    return %c0_i32, %c0_i32_0 : i32, i32
  }
  func.func @transform_3(%arg0: i32) -> (i32, i32) {
    %c0_i32 = arith.constant 0 : i32
    %c0_i32_0 = arith.constant 0 : i32
    return %arg0, %c0_i32 : i32, i32
  }
  func.func @transform_4(%arg0: i32) -> (i32, i32) {
    %c0_i32 = arith.constant 0 : i32
    %c0_i32_0 = arith.constant 0 : i32
    return %c0_i32, %arg0 : i32, i32
  }
  func.func @transform_5(%arg0: i32) -> (i32, i32) {
    %c0_i32 = arith.constant 0 : i32
    %c0_i32_0 = arith.constant 0 : i32
    return %arg0, %c0_i32 : i32, i32
  }
  func.func @transform_6(%arg0: i32) -> (i32, i32) {
    %c0_i32 = arith.constant 0 : i32
    %c0_i32_0 = arith.constant 0 : i32
    %c0_i32_1 = arith.constant 0 : i32
    return %c0_i32, %c0_i32_0 : i32, i32
  }
  func.func @transform_7(%arg0: i32) -> (i32, i32) {
    %c0_i32 = arith.constant 0 : i32
    %c0_i32_0 = arith.constant 0 : i32
    %c0_i32_1 = arith.constant 0 : i32
    return %c0_i32, %c0_i32_0 : i32, i32
  }
  func.func @transform_8(%arg0: i32) -> (i32, i32) {
    %c0_i32 = arith.constant 0 : i32
    %c0_i32_0 = arith.constant 0 : i32
    %c0_i32_1 = arith.constant 0 : i32
    return %c0_i32, %c0_i32_0 : i32, i32
  }
  func.func @transform_9(%arg0: i32) -> (i32, i32) {
    %c0_i32 = arith.constant 0 : i32
    %c0_i32_0 = arith.constant 0 : i32
    %c0_i32_1 = arith.constant 0 : i32
    return %c0_i32, %c0_i32_0 : i32, i32
  }
  func.func @transform_10(%arg0: i32) -> (i32, i32) {
    %c0_i32 = arith.constant 0 : i32
    %c0_i32_0 = arith.constant 0 : i32
    %c0_i32_1 = arith.constant 0 : i32
    return %c0_i32, %c0_i32_0 : i32, i32
  }
  func.func @transform_11(%arg0: i32) -> (i32, i32) {
    %c0_i32 = arith.constant 0 : i32
    %c0_i32_0 = arith.constant 0 : i32
    %c0_i32_1 = arith.constant 0 : i32
    return %c0_i32, %c0_i32_0 : i32, i32
  }
  func.func @transform_12(%arg0: i32) -> (i32, i32) {
    %c0_i32 = arith.constant 0 : i32
    %c0_i32_0 = arith.constant 0 : i32
    %c0_i32_1 = arith.constant 0 : i32
    return %c0_i32, %c0_i32_0 : i32, i32
  }
}

</mosaic_0001>

<bundles_post_ra>
// kernel: graph_encoder_forward.8
= control target key start
LH: loop header
LB: loop body
LE: loop exit
PB: predicated region body
PF: predicated region fallthrough
CT: control target
= control target key end

     0   :  { %vm16_vm0 = vcmask 261120   ;;  %s164_s0 = inlined_call_operand.vmem [shape: f32[16,32], index: 0, kind: input, shape index: {}]   ;;  %s165_s1 = inlined_call_operand.vmem [shape: f32[1,32], index: 1, kind: input, shape index: {}]   ;;  %s166_s2 = inlined_call_operand.vmem [shape: f32[1,32], index: 2, kind: input, shape index: {}]   ;;  %s167_s3 = inlined_call_operand.vmem [shape: f32[16,32], index: 3, kind: output, shape index: {}]  }
   0x1   :  { %v14_v0 = vld [vmem:[%s164_s0] sm:$0xff]  ;;  %v15_v1 = vld [vmem:[%s164_s0 + $0x8] sm:$0xff] }
   0x2   :  { %v17_v2 = vsel %vm16_vm0, %v14_v0, 0.0  ;;  %v20_v3 = vsel %vm16_vm0, %v15_v1, 0.0  ;;  %v102_v21 = vld [vmem:[%s165_s1] ss:$0 sm:$0xff] }
   0x3   :  { %18 = vadd.xlane.f32.xlu0 %v17_v2  ;;  %v103_v23 = vld [vmem:[%s166_s2] ss:$0 sm:$0xff] }
   0x7   :  { %21 = vadd.xlane.f32.xlu0 %v20_v3 }
  0x90   :  { %v19_v4 = vpop.xlane.xlu0 %18 }
  0x91   :  { %v24_v5 = vmul.f32 0.03125, %v19_v4 }
  0x93   :  { %v26_v6 = vsub.f32 %v14_v0, %v24_v5 }
  0x94   :  { %v22_v7 = vpop.xlane.xlu0 %21 }
  0x95   :  { %v25_v8 = vmul.f32 0.03125, %v22_v7  ;;  %v28_v9 = vmul.f32 %v26_v6, %v26_v6 }
  0x97   :  { %v27_v10 = vsub.f32 %v15_v1, %v25_v8  ;;  %v30_v11 = vsel %vm16_vm0, %v28_v9, 0.0 }
  0x98   :  { %31 = vadd.xlane.f32.xlu1 %v30_v11 }
  0x99   :  { %v29_v12 = vmul.f32 %v27_v10, %v27_v10 }
  0x9b   :  { %v33_v13 = vsel %vm16_vm0, %v29_v12, 0.0 }
  0x9c   :  { %34 = vadd.xlane.f32.xlu1 %v33_v13 }
 0x125   :  { %v32_v14 = vpop.xlane.xlu1 %31 }
 0x126   :  { %v36_v15 = vmul.f32 0.03125, %v32_v14 }
 0x128   :  { %v38_v16 = vadd.f32 1e-05, %v36_v15 }
 0x129   :  { %v35_v17 = vpop.xlane.xlu1 %34 }
 0x12a   :  { %104 = vrsqrt.f32 %v38_v16  ;;  %v37_v18 = vmul.f32 0.03125, %v35_v17 }
 0x12c   :  { %v39_v19 = vadd.f32 1e-05, %v37_v18 }
 0x12e   :  { %106 = vrsqrt.f32 %v39_v19 }
 0x134   :  { %v105_v20 = vpop.eup %104 }
 0x135   :  { %v42_v22 = vmul.f32 %v105_v20, %v26_v6 }
 0x137   :  { %v51_v24 = vmul.f32 %v102_v21, %v42_v22 }
 0x138   :  { %v107_v25 = vpop.eup %106 }
 0x139   :  { %v60_v26 = vadd.f32 %v103_v23, %v51_v24  ;;  %v43_v27 = vmul.f32 %v107_v25, %v27_v10 }
 0x13b   :  { %v64_v28 = vand.u32 2147483647, %v60_v26  ;;  %v52_v29 = vmul.f32 %v102_v21, %v43_v27  ;;  %v62_v48 = vmax.f32 %v60_v26, 0.0 }
 0x13d   :  { %v66_v30 = vsub.f32 0.0, %v64_v28  ;;  %v61_v31 = vadd.f32 %v103_v23, %v52_v29 }
 0x13f   :  { %v68_v32 = vmul.f32 1.442695, %v66_v30  ;;  %v65_v33 = vand.u32 2147483647, %v61_v31  ;;  %v63_v55 = vmax.f32 %v61_v31, 0.0 }
 0x141   :  { %108 = vpow2.f32 %v68_v32  ;;  %v67_v34 = vsub.f32 0.0, %v65_v33 }
 0x143   :  { %v70_v35 = vmul.f32 1.442695, %v67_v34 }
 0x145   :  { %110 = vpow2.f32 %v70_v35 }
 0x14b   :  { %v109_v36 = vpop.eup %108 }
 0x14c   :  { %v72_v37 = vadd.f32 1.0, %v109_v36  ;;  %v75_v40 = vmul.f32 -0.5, %v109_v36  ;;  %v78_v43 = vand.u32 2147483647, %v109_v36 }
 0x14e   :  { %112 = vlog2.f32 %v72_v37  ;;  %v76_v41 = vadd.f32 1.0, %v75_v40  ;;  %vm79_vm1 = vcmp.lt.f32.partialorder %v78_v43, 0.0004427343 }
 0x14f   :  { %v111_v38 = vpop.eup %110 }
 0x150   :  { %v81_v39 = vadd.f32 1.0, %v111_v38  ;;  %v84_v42 = vmul.f32 -0.5, %v111_v38  ;;  %v77_v46 = vmul.f32 %v109_v36, %v76_v41  ;;  %v87_v49 = vand.u32 2147483647, %v111_v38 }
 0x152   :  { %114 = vlog2.f32 %v81_v39  ;;  %v85_v47 = vadd.f32 1.0, %v84_v42  ;;  %vm88_vm2 = vcmp.lt.f32.partialorder %v87_v49, 0.0004427343 }
 0x154   :  { %v86_v54 = vmul.f32 %v111_v38, %v85_v47 }
 0x158   :  { %v113_v44 = vpop.eup %112 }
 0x159   :  { %v74_v45 = vmul.f32 0.6931472, %v113_v44 }
 0x15b   :  { %v80_v50 = vsel %vm79_vm1, %v77_v46, %v74_v45 }
 0x15c   :  { %v115_v51 = vpop.eup %114  ;;  %v90_v52 = vadd.f32 %v80_v50, %v62_v48 }
 0x15d   :  { %v83_v53 = vmul.f32 0.6931472, %v115_v51 }
 0x15e   :  { %116 = vtanh.f32 %v90_v52 }
 0x15f   :  { %v89_v56 = vsel %vm88_vm2, %v86_v54, %v83_v53 }
 0x160   :  { %v91_v57 = vadd.f32 %v89_v56, %v63_v55 }
 0x162   :  { %118 = vtanh.f32 %v91_v57 }
 0x168   :  { %v117_v58 = vpop.eup %116 }
 0x169   :  { %v94_v59 = vmul.f32 %v117_v58, %v60_v26 }
 0x16b   :  { %96 = vst.msk [vmem:[%s167_s3] sm:$0xff] %vm16_vm0, %v94_v59 }
 0x16c   :  { %v119_v60 = vpop.eup %118 }
 0x16d   :  { %v95_v61 = vmul.f32 %v119_v60, %v61_v31 }
 0x16f   :  { %97 = vst.msk [vmem:[%s167_s3 + $0x8] sm:$0xff] %vm16_vm0, %v95_v61 }

// kernel: graph_encoder_forward.13
= control target key start
LH: loop header
LB: loop body
LE: loop exit
PB: predicated region body
PF: predicated region fallthrough
CT: control target
= control target key end

     0   :  { %11 = vsyncpa [#allocation5], 0  ;;  %vm35_vm0 = vcmask 261120   ;;  %vm25_vm1 = vcmask 123904   ;;  %v129_v3 = vlaneseq  ;;  %vm27_vm2 = vcmask 1024   ;;  %s473_s0 = inlined_call_operand.vmem [shape: f32[16,32], index: 0, kind: input, shape index: {}]   ;;  %s474_s1 = inlined_call_operand.vmem [shape: s32[1,16], index: 1, kind: input, shape index: {}]   ;;  %s475_s2 = inlined_call_operand.vmem [shape: f32[32,16], index: 2, kind: input, shape index: {}]   ;;  %s476_s3 = inlined_call_operand.vmem [shape: f32[1,16], index: 3, kind: input, shape index: {}]   ;;  %s477_s4 = inlined_call_operand.hbm [shape: f32[16,16], index: 4, kind: output, shape index: {0}]   ;;  %s478_s5 = inlined_call_operand.hbm [shape: f32[2,16], index: 5, kind: output, shape index: {1}]  }
   0x1   :  { %v31_v0 = vld [vmem:[%s475_s2] sm:$0xff]  ;;  %v32_v1 = vld [vmem:[%s475_s2 + $0x8] sm:$0xff]  ;;  %v33_v2 = vld [vmem:[%s475_s2 + $0x10] sm:$0xff]  ;;  %v379_v7 = vmov 0.0  }
   0x2   :  { %v309_v4 = vpack.c.bf16 %v32_v1, %v31_v0  ;;  %v34_v5 = vld [vmem:[%s475_s2 + $0x18] sm:$0xff]  ;;  %v29_v6 = vld [vmem:[%s473_s0] sm:$0xff]  ;;  %26 = vst.msk [vmem:[#allocation2] sm:$0x3] %vm25_vm1, %v379_v7  ;;  %v130_v9 = vshrl.u32 %v129_v3, 7 }
   0x3   :  { %v313_v8 = vpack.c.bf16 %v34_v5, %v33_v2  ;;  %299 = vmatprep.mubr.msk.f32.mxu0 %vm35_vm0, %v29_v6  ;;  %28 = vst.msk [vmem:[#allocation3] sm:$0x3] %vm27_vm2, %v379_v7  ;;  %v278_v10 = vld [vmem:[%s474_s1] ss:$0 sm:$0xff] }
   0x4   :  { %12 = vsyncpa [#allocation7], 0  ;;  %310 = vmatprep.subr.bf16.mxu0 %v309_v4  ;;  %vm136_vm3 = vcmp.eq.s32.totalorder %v130_v9, %v278_v10  ;;  %v30_v13 = vld [vmem:[%s473_s0 + $0x8] sm:$0xff]  ;;  %v380_v14 = vmov 0.0|0.0   ;;  %vm381_vm4 = vmmov 0   ;;  %v382_v15 = vmov 0  }
   0x5   :  { %312 = vmatpush3.bf16.msra.mxu0 %v309_v4  ;;  %v279_v11 = vsel %vm136_vm3, 1.0, %v379_v7  ;;  %317 = vmatprep.subr.bf16.mxu1 %v380_v14  ;;  %v277_v22 = vld [vmem:[%s476_s3] ss:$0 sm:$0xff]  ;;  %vm126_vm5 = vcmask 130048   ;;  %s383_s6 = smov [#allocation4]  }
   0x6   :  { %314 = vmatprep.subr.bf16.mxu0 %v313_v8  ;;  %v217_v12 = vsel %vm25_vm1, %v279_v11, 0.0  ;;  %306 = vmatprep.mubr.msk.f32.mxu1 %vm381_vm4, %v379_v7  ;;  %s250_s7 = sshll.u32 %s383_s6, 4  ;;  %s251_s7 = int_to_ptr.vmem [resolvable:$true] %s250_s7 }
   0x7   :  { %218 = vadd.xlane.f32.xlu0 %v217_v12  ;;  %s331_s8 = scalar_lea.vmem %s251_s7, 256  ;;  %p336_p1 = scmp.lt.s32.totalorder %s251_s7, %s251_s7 }
   0x8   :  { %328 = vset.pattern.permute.xlu0 %v382_v15  ;;  %p332_p0 = scmp.ne.s32.totalorder %s251_s7, %s331_s8  ;;  %p337_p2 = scmp.lt.s32.totalorder %s331_s8, %s331_s8 }
   0x9   :  { %316 = vmatpush3.bf16.msra.mxu0 %v313_v8 }
   0xa   :  { %v216_v16 = vld [vmem:[#allocation3] sm:$0x3]  ;;  %p338_p3 = por %p337_p2, %p336_p1 }
   0xc   :  { %300 = vmatmul.mubr.msk.f32.vlgmr.msra.gmra.mrb[0].mxu0 %vm35_vm0, %v30_v13  ;;  %p339_p4 = pnand %p338_p3, %p332_p0 }
  0x94   :  { %v219_v17 = vpop.xlane.xlu0 %218 }
  0x95   :  { %v220_v18 = vadd.f32 %v219_v17, %v216_v16 }
  0x97   :  { %222 = vst.msk [vmem:[#allocation3] sm:$0x3] %vm27_vm2, %v220_v18 }
  0x9e   :  { %v226_v19 = vld [vmem:[#allocation3] sm:$0x3] }
  0x9f   :  { %v227_v20 = vmax.f32 %v226_v19, 1.0 }
  0xa1   :  { %329 = vrcp.f32 %v227_v20 }
  0xab   :  { %v330_v21 = vpop.eup %329 }
  0xac   :  { %232 = vperm.xlu0 %328, %v330_v21  }
  0xdf   :  { %v301_v23 = vpop.f32.mrb[0].mxu0 }
  0xe0   :  { %v108_v24 = vpop.f32.mrb[1].mxu0  ;;  %v125_v25 = vadd.f32 %v301_v23, %v277_v22 }
  0xe1   :  { %v124_v26 = vadd.f32 %v277_v22, %v108_v24  ;;  %v318_v27 = vpack.c.bf16 %v301_v23, %v108_v24 }
  0xe2   :  { %128 = vst.msk [vmem:[#allocation4 + $0x8] sm:$0xff] %vm126_vm5, %v125_v25 }
  0xe3   :  { %127 = vst.msk [vmem:[#allocation4] sm:$0xff] %vm126_vm5, %v124_v26  ;;  %319 = vmatpush3.bf16.msra.mxu1 %v318_v27 }
  0xe6   :  { %307 = vmatmul.mubr.msk.f32.vlgmr.msra.gmra.mrb[0].mxu1 %vm126_vm5, %v279_v11 }
  0xe7   :  { %342 = shalt.err (!%p339_p4)
}
  0xe8   :  { %s343_s10 = scalar_lea.hbm %s477_s4, 256 }
  0xe9   :  { %p344_p5 = scmp.ne.s32.totalorder %s477_s4, %s343_s10  ;;  %p347_p6 = scmp.lt.u32.totalorder %s343_s10, %s477_s4 }
  0xeb   :  { %p349_p7 = pnand %p347_p6, %p344_p5 }
  0xed   :  { %352 = shalt.err (!%p349_p7)
}
  0xee   :  { %s384_s15 = smov 128   ;;  %s385_s16 = smov 8   ;;  %v139_v28 = vld [vmem:[#allocation2] sm:$0x3] }
  0xef   :  { %256 = dma.vmem_to_hbm [thread:$0]  %s251_s7, 256, %s477_s4, [#allocation5], %s384_s15, %s384_s15, %s385_s16  }
  0xf0   :  { %s386_s19 = smov [#allocation6]  }
  0xf1   :  { %s263_s20 = sshll.u32 %s386_s19, 4  ;;  %s264_s20 = int_to_ptr.vmem [resolvable:$true] %s263_s20 }
  0xf2   :  { %s353_s21 = scalar_lea.vmem %s264_s20, 32  ;;  %p358_p9 = scmp.lt.s32.totalorder %s264_s20, %s264_s20 }
  0xf3   :  { %p354_p8 = scmp.ne.s32.totalorder %s264_s20, %s353_s21  ;;  %p359_p10 = scmp.lt.s32.totalorder %s353_s21, %s353_s21 }
  0xf5   :  { %p360_p11 = por %p359_p10, %p358_p9 }
  0xf7   :  { %p361_p12 = pnand %p360_p11, %p354_p8 }
 0x12b   :  { %v233_v32 = vpop.permute.xlu0 %232 }
 0x1b9   :  { %v209_v29 = vpop.f32.mrb[0].mxu1 }
 0x1ba   :  { %v213_v30 = vadd.f32 %v209_v29, %v139_v28  ;;  %v308_v31 = vpop.f32.mrb[1].mxu1 }
 0x1bc   :  { %215 = vst.msk [vmem:[#allocation2] sm:$0x3] %vm25_vm1, %v213_v30 }
 0x1c3   :  { %v229_v33 = vld [vmem:[#allocation2] sm:$0x3] }
 0x1c4   :  { %v235_v34 = vmul.f32 %v233_v32, %v229_v33 }
 0x1c6   :  { %v243_v35 = vadd.f32 %v277_v22, %v235_v34 }
 0x1c8   :  { %244 = vst.msk [vmem:[#allocation6] sm:$0x3] %vm25_vm1, %v243_v35 }
 0x1c9   :  { %364 = shalt.err (!%p361_p12)
}
 0x1ca   :  { %s365_s23 = scalar_lea.hbm %s478_s5, 32 }
 0x1cb   :  { %p366_p13 = scmp.ne.s32.totalorder %s478_s5, %s365_s23  ;;  %p369_p0 = scmp.lt.u32.totalorder %s365_s23, %s478_s5 }
 0x1cd   :  { %p371_p1 = pnand %p369_p0, %p366_p13 }
 0x1cf   :  { %374 = shalt.err (!%p371_p1)
}
 0x1d0   :  { %266 = dma.vmem_to_hbm [thread:$0]  %s264_s20, 32, %s478_s5, [#allocation7]  }
 0x1d1   :  { %375 = dma.done.wait [#allocation5], 256  }
 0x1d2   :  { %376 = vsyncadd [#allocation5], 4294967040 }
 0x1d3   :  { %377 = dma.done.wait [#allocation7], 32  }
 0x1d4   :  { %378 = vsyncadd [#allocation7], 4294967264 }
 0x1d5   :  { %273 = vsyncpa [#allocation5], 1 }
 0x1d6   :  { %274 = vsyncpa [#allocation7], 1 }

// kernel: graph_encoder_forward.9
= control target key start
LH: loop header
LB: loop body
LE: loop exit
PB: predicated region body
PF: predicated region fallthrough
CT: control target
= control target key end

     0   :  { %v1380_v0 = vmov 0   ;;  %vm48_vm0 = vcmask 261120   ;;  %v1381_v20 = vmov 0.0   ;;  %v71_v21 = vlaneseq  ;;  %s1892_s3 = inlined_call_operand.vmem [shape: s32[128,1], index: 3, kind: input, shape index: {}]   ;;  %s1893_s1 = inlined_call_operand.vmem [shape: f32[16,32], index: 1, kind: input, shape index: {}]   ;;  %s1894_s4 = inlined_call_operand.vmem [shape: s32[1,128], index: 4, kind: input, shape index: {}]   ;;  %s1895_s5 = inlined_call_operand.vmem [shape: f32[128,32], index: 5, kind: input, shape index: {}]   ;;  %s1896_s0 = inlined_call_operand.<no memory space> [shape: f32[1,1], index: 0, kind: input, shape index: {}]   ;;  %s1897_s6 = inlined_call_operand.vmem [shape: f32[32,64], index: 6, kind: input, shape index: {}]   ;;  %s1898_s7 = inlined_call_operand.vmem [shape: f32[1,64], index: 7, kind: input, shape index: {}]   ;;  %s1899_s10 = inlined_call_operand.vmem [shape: f32[64,32], index: 10, kind: input, shape index: {}]   ;;  %s1900_s8 = inlined_call_operand.vmem [shape: f32[1,64], index: 8, kind: input, shape index: {}]   ;;  %s1901_s9 = inlined_call_operand.vmem [shape: f32[1,64], index: 9, kind: input, shape index: {}]   ;;  %s1902_s11 = inlined_call_operand.vmem [shape: f32[1,32], index: 11, kind: input, shape index: {}]   ;;  %s1903_s2 = inlined_call_operand.vmem [shape: f32[16,32], index: 2, kind: input, shape index: {}]   ;;  %s1904_s12 = inlined_call_operand.vmem [shape: f32[16,32], index: 12, kind: output, shape index: {}]  }
   0x1   :  { %1337 = vset.pattern.permute.xlu1 %v1380_v0  ;;  %1336 = vset.pattern.permute.xlu0 %v1380_v0  ;;  %v56_v1 = vld [vmem:[%s1892_s3 + $0x10] sm:$0xff]  ;;  %v54_v2 = vld [vmem:[%s1892_s3] sm:$0xff]  ;;  %v57_v3 = vld [vmem:[%s1892_s3 + $0x18] sm:$0xff]  ;;  %49 = vst.msk [vmem:[#allocation3] sm:$0xff] %vm48_vm0, %v1381_v20  ;;  %vm187_vm1 = vcmask 130048   ;;  %v1383_v59 = vmov 1.0  }
   0x2   :  { %80 = vperm.xlu1 %1337, %v56_v1   ;;  %74 = vperm.xlu0 %1336, %v54_v2   ;;  %v55_v4 = vld [vmem:[%s1892_s3 + $0x8] sm:$0xff]  ;;  %v1464_v5 = vld [vmem:[%s1893_s1] sm:$0xff]  ;;  %v61_v10 = vld [vmem:[%s1892_s3 + $0x38] sm:$0xff]  ;;  %50 = vst.msk [vmem:[#allocation3 + $0x8] sm:$0xff] %vm48_vm0, %v1381_v20  ;;  %v1518_v22 = vand.u32 127, %v71_v21  ;;  %v1570_v56 = vshrl.u32 %v71_v21, 7 }
   0x3   :  { %v1469_v6 = vld [vmem:[%s1893_s1 + $0x8] sm:$0xff]  ;;  %v58_v8 = vld [vmem:[%s1892_s3 + $0x20] sm:$0xff]  ;;  %v60_v11 = vld [vmem:[%s1892_s3 + $0x30] sm:$0xff]  ;;  %51 = vst.msk [vmem:[#allocation4] sm:$0xff] %vm48_vm0, %v1381_v20  ;;  %v1382_v55 = vmov -1e+30  }
   0x4   :  { %v59_v7 = vld [vmem:[%s1892_s3 + $0x28] sm:$0xff]  ;;  %v1240_v9 = vpack.c.bf16 %v1469_v6, %v1464_v5  ;;  %v62_v13 = vld [vmem:[%s1892_s3 + $0x40] sm:$0xff]  ;;  %v65_v14 = vld [vmem:[%s1892_s3 + $0x58] sm:$0xff]  ;;  %52 = vst.msk [vmem:[#allocation4 + $0x8] sm:$0xff] %vm48_vm0, %v1381_v20  ;;  %v1573_v57 = vadd.s32 8, %v1570_v56 }
   0x5   :  { %v63_v12 = vld [vmem:[%s1892_s3 + $0x48] sm:$0xff]  ;;  %v64_v15 = vld [vmem:[%s1892_s3 + $0x50] sm:$0xff]  ;;  %v66_v17 = vld [vmem:[%s1892_s3 + $0x60] sm:$0xff] }
   0x6   :  { %83 = vperm.xlu1 %1337, %v57_v3   ;;  %77 = vperm.xlu0 %1336, %v55_v4   ;;  %v67_v16 = vld [vmem:[%s1892_s3 + $0x68] sm:$0xff]  ;;  %v69_v18 = vld [vmem:[%s1892_s3 + $0x78] sm:$0xff]  ;;  %v68_v19 = vld [vmem:[%s1892_s3 + $0x70] sm:$0xff] }
   0x7   :  { %1241 = vmatprep.subr.bf16.mxu1 %v1240_v9  ;;  %v1578_v58 = vld [vmem:[%s1894_s4] ss:$0 sm:$0xff]  ;;  %v172_v60 = vld [vmem:[%s1895_s5 + $0x8] sm:$0xff]  ;;  %v174_v2 = vld [vmem:[%s1895_s5 + $0x18] sm:$0xff] }
   0x8   :  { %1243 = vmatpush3.bf16.msra.mxu1 %v1240_v9  ;;  %v171_v61 = vld [vmem:[%s1895_s5] sm:$0xff]  ;;  %v173_v4 = vld [vmem:[%s1895_s5 + $0x10] sm:$0xff] }
   0xa   :  { %89 = vperm.xlu1 %1337, %v59_v7   ;;  %86 = vperm.xlu0 %1336, %v58_v8  }
   0xe   :  { %95 = vperm.xlu1 %1337, %v61_v10   ;;  %92 = vperm.xlu0 %1336, %v60_v11  }
  0x12   :  { %101 = vperm.xlu1 %1337, %v63_v12   ;;  %98 = vperm.xlu0 %1336, %v62_v13   ;;  %v176_v12 = vld [vmem:[%s1895_s5 + $0x28] sm:$0xff] }
  0x16   :  { %107 = vperm.xlu1 %1337, %v65_v14   ;;  %104 = vperm.xlu0 %1336, %v64_v15   ;;  %v175_v14 = vld [vmem:[%s1895_s5 + $0x20] sm:$0xff]  ;;  %v1609_v15 = vstv %s1896_s0 }
  0x1a   :  { %113 = vperm.xlu1 %1337, %v67_v16   ;;  %110 = vperm.xlu0 %1336, %v66_v17  }
  0x1e   :  { %119 = vperm.xlu1 %1337, %v69_v18   ;;  %116 = vperm.xlu0 %1336, %v68_v19  }
  0x81   :  { %v81_v23 = vpop.permute.xlu1 %80  ;;  %v75_v24 = vpop.permute.xlu0 %74 }
  0x82   :  { %vm121_vm2 = vcmp.eq.s32.totalorder %v1518_v22, %v75_v24  ;;  %vm123_vm3 = vcmp.eq.s32.totalorder %v1518_v22, %v81_v23  ;;  %v178_v23 = vld [vmem:[%s1895_s5 + $0x38] sm:$0xff] }
  0x83   :  { %v995_v25 = vsel %vm121_vm2, 1.0, %v1381_v20  ;;  %v997_v28 = vsel %vm123_vm3, 1.0, %v1381_v20 }
  0x84   :  { %1116 = vmatprep.mubr.msk.f32.mxu1 %vm187_vm1, %v995_v25 }
  0x85   :  { %v84_v26 = vpop.permute.xlu1 %83  ;;  %v78_v27 = vpop.permute.xlu0 %77 }
  0x86   :  { %vm122_vm4 = vcmp.eq.s32.totalorder %v1518_v22, %v78_v27  ;;  %vm124_vm5 = vcmp.eq.s32.totalorder %v1518_v22, %v84_v26  ;;  %v177_v26 = vld [vmem:[%s1895_s5 + $0x30] sm:$0xff] }
  0x87   :  { %v996_v29 = vsel %vm122_vm4, 1.0, %v1381_v20  ;;  %v998_v32 = vsel %vm124_vm5, 1.0, %v1381_v20  ;;  %vm46_vm4 = vcmask 253952   ;;  %vm534_vm5 = vcmp.eq.s32.totalorder %v1570_v56, %v1578_v58 }
  0x88   :  { %1117 = vmatmul.mubr.msk.f32.vlgmr.msra.gmra.mrb[0].mxu1 %vm187_vm1, %v996_v29  ;;  %47 = vst.msk [vmem:[#allocation2] sm:$0x1] %vm46_vm4, %v1382_v55  ;;  %1207 = vmatprep.mubr.msk.f32.mxu0 %vm534_vm5, %v1383_v59 }
  0x89   :  { %v90_v30 = vpop.permute.xlu1 %89  ;;  %v87_v31 = vpop.permute.xlu0 %86  ;;  %1119 = vmatprep.mubr.msk.f32.mxu1 %vm187_vm1, %v997_v28 }
  0x8a   :  { %vm125_vm6 = vcmp.eq.s32.totalorder %v1518_v22, %v87_v31  ;;  %vm126_vm7 = vcmp.eq.s32.totalorder %v1518_v22, %v90_v30 }
  0x8b   :  { %v999_v33 = vsel %vm125_vm6, 1.0, %v1381_v20  ;;  %v1000_v36 = vsel %vm126_vm7, 1.0, %v1381_v20 }
  0x8c   :  { %1120 = vmatmul.mubr.msk.f32.gmra.mrb[2].mxu1 %vm187_vm1, %v998_v32 }
  0x8d   :  { %v96_v34 = vpop.permute.xlu1 %95  ;;  %v93_v35 = vpop.permute.xlu0 %92  ;;  %1122 = vmatprep.mubr.msk.f32.mxu1 %vm187_vm1, %v999_v33 }
  0x8e   :  { %vm127_vm8 = vcmp.eq.s32.totalorder %v1518_v22, %v93_v35  ;;  %vm128_vm9 = vcmp.eq.s32.totalorder %v1518_v22, %v96_v34 }
  0x8f   :  { %v1001_v37 = vsel %vm127_vm8, 1.0, %v1381_v20  ;;  %v1002_v40 = vsel %vm128_vm9, 1.0, %v1381_v20  ;;  %vm841_vm8 = vcmask 523264  }
  0x90   :  { %1123 = vmatmul.mubr.msk.f32.gmra.mrb[4].mxu1 %vm187_vm1, %v1000_v36 }
  0x91   :  { %v102_v38 = vpop.permute.xlu1 %101  ;;  %v99_v39 = vpop.permute.xlu0 %98  ;;  %1125 = vmatprep.mubr.msk.f32.mxu1 %vm187_vm1, %v1001_v37  ;;  %v180_v37 = vld [vmem:[%s1895_s5 + $0x48] sm:$0xff] }
  0x92   :  { %vm129_vm10 = vcmp.eq.s32.totalorder %v1518_v22, %v99_v39  ;;  %vm130_vm11 = vcmp.eq.s32.totalorder %v1518_v22, %v102_v38 }
  0x93   :  { %v1003_v41 = vsel %vm129_vm10, 1.0, %v1381_v20  ;;  %v1004_v44 = vsel %vm130_vm11, 1.0, %v1381_v20 }
  0x94   :  { %1126 = vmatmul.mubr.msk.f32.gmra.mrb[6].mxu1 %vm187_vm1, %v1002_v40 }
  0x95   :  { %v108_v42 = vpop.permute.xlu1 %107  ;;  %v105_v43 = vpop.permute.xlu0 %104  ;;  %1128 = vmatprep.mubr.msk.f32.mxu1 %vm187_vm1, %v1003_v41  ;;  %v179_v41 = vld [vmem:[%s1895_s5 + $0x40] sm:$0xff] }
  0x96   :  { %vm131_vm12 = vcmp.eq.s32.totalorder %v1518_v22, %v105_v43  ;;  %vm132_vm13 = vcmp.eq.s32.totalorder %v1518_v22, %v108_v42 }
  0x97   :  { %v1005_v45 = vsel %vm131_vm12, 1.0, %v1381_v20  ;;  %v1006_v48 = vsel %vm132_vm13, 1.0, %v1381_v20 }
  0x98   :  { %1129 = vmatmul.mubr.msk.f32.gmra.mrb[8].mxu1 %vm187_vm1, %v1004_v44 }
  0x99   :  { %v114_v46 = vpop.permute.xlu1 %113  ;;  %v111_v47 = vpop.permute.xlu0 %110  ;;  %1131 = vmatprep.mubr.msk.f32.mxu1 %vm187_vm1, %v1005_v45 }
  0x9a   :  { %vm133_vm14 = vcmp.eq.s32.totalorder %v1518_v22, %v111_v47  ;;  %vm134_vm15 = vcmp.eq.s32.totalorder %v1518_v22, %v114_v46 }
  0x9b   :  { %v1007_v49 = vsel %vm133_vm14, 1.0, %v1381_v20  ;;  %v1008_v52 = vsel %vm134_vm15, 1.0, %v1381_v20 }
  0x9c   :  { %1132 = vmatmul.mubr.msk.f32.gmra.mrb[10].mxu1 %vm187_vm1, %v1006_v48 }
  0x9d   :  { %v120_v50 = vpop.permute.xlu1 %119  ;;  %v117_v51 = vpop.permute.xlu0 %116  ;;  %1134 = vmatprep.mubr.msk.f32.mxu1 %vm187_vm1, %v1007_v49 }
  0x9e   :  { %vm135_vm2 = vcmp.eq.s32.totalorder %v1518_v22, %v117_v51  ;;  %vm136_vm3 = vcmp.eq.s32.totalorder %v1518_v22, %v120_v50 }
  0x9f   :  { %v1009_v53 = vsel %vm135_vm2, 1.0, %v1381_v20  ;;  %v1010_v54 = vsel %vm136_vm3, 1.0, %v1381_v20 }
  0xa0   :  { %1135 = vmatmul.mubr.msk.f32.gmra.mrb[12].mxu1 %vm187_vm1, %v1008_v52 }
  0xa1   :  { %1137 = vmatprep.mubr.msk.f32.mxu1 %vm187_vm1, %v1009_v53 }
  0xa4   :  { %1138 = vmatmul.mubr.msk.f32.gmra.mrb[14].mxu1 %vm187_vm1, %v1010_v54  ;;  %vm535_vm1 = vcmp.eq.s32.totalorder %v1573_v57, %v1578_v58  ;;  %v541_v57 = vld [vmem:[#allocation3 + $0x8] sm:$0xff]  ;;  %v540_v58 = vld [vmem:[#allocation3] sm:$0xff] }
  0xa5   :  { %1172 = vmatprep.mubr.msk.f32.mxu1 %vm534_vm5, %v1383_v59 }
 0x15b   :  { %v1118_v62 = vpop.f32.mrb[0].mxu1 }
 0x15c   :  { %v308_v63 = vadd.f32 %v1118_v62, %v172_v60  ;;  %v302_v0 = vpop.f32.mrb[1].mxu1  ;;  %v182_v60 = vld [vmem:[%s1895_s5 + $0x58] sm:$0xff] }
 0x15d   :  { %v303_v1 = vadd.f32 %v302_v0, %v171_v61  ;;  %v181_v0 = vld [vmem:[%s1895_s5 + $0x50] sm:$0xff] }
 0x15e   :  { %v382_v3 = vmax.f32 %v308_v63, 0.0 }
 0x15f   :  { %v381_v7 = vmax.f32 %v303_v1, 0.0  ;;  %v1121_v8 = vpop.f32.mrb[2].mxu1 }
 0x160   :  { %v318_v9 = vadd.f32 %v1121_v8, %v174_v2  ;;  %v312_v10 = vpop.f32.mrb[3].mxu1  ;;  %v1601_v13 = vadd.f32 1e-07, %v382_v3 }
 0x161   :  { %v313_v11 = vadd.f32 %v312_v10, %v173_v4  ;;  %v1611_v16 = vadd.f32 1e-07, %v381_v7 }
 0x162   :  { %v384_v17 = vmax.f32 %v318_v9, 0.0  ;;  %v1618_v24 = vmul.f32 %v1609_v15, %v1601_v13 }
 0x163   :  { %v1124_v18 = vpop.f32.mrb[4].mxu1  ;;  %v383_v19 = vmax.f32 %v313_v11, 0.0  ;;  %v1625_v27 = vmul.f32 %v1609_v15, %v1611_v16 }
 0x164   :  { %v328_v20 = vadd.f32 %v1124_v18, %v176_v12  ;;  %v322_v21 = vpop.f32.mrb[5].mxu1  ;;  %v1627_v28 = vadd.f32 1e-07, %v384_v17  ;;  %v432_v38 = vsel %vm48_vm0, %v1618_v24, -inf }
 0x165   :  { %v323_v22 = vadd.f32 %v322_v21, %v175_v14  ;;  %v1629_v31 = vadd.f32 1e-07, %v383_v19  ;;  %v431_v42 = vsel %vm48_vm0, %v1625_v27, -inf  ;;  %v184_v19 = vld [vmem:[%s1895_s5 + $0x68] sm:$0xff] }
 0x166   :  { %v386_v25 = vmax.f32 %v328_v20, 0.0  ;;  %v1651_v43 = vmul.f32 %v1609_v15, %v1627_v28 }
 0x167   :  { %v385_v29 = vmax.f32 %v323_v22, 0.0  ;;  %v1127_v30 = vpop.f32.mrb[6].mxu1  ;;  %v1659_v47 = vmul.f32 %v1609_v15, %v1629_v31 }
 0x168   :  { %v1631_v32 = vadd.f32 1e-07, %v386_v25  ;;  %v338_v33 = vadd.f32 %v1127_v30, %v178_v23  ;;  %v332_v34 = vpop.f32.mrb[7].mxu1  ;;  %v434_v1 = vsel %vm48_vm0, %v1651_v43, -inf  ;;  %v183_v23 = vld [vmem:[%s1895_s5 + $0x60] sm:$0xff] }
 0x169   :  { %v1633_v35 = vadd.f32 1e-07, %v385_v29  ;;  %v333_v36 = vadd.f32 %v332_v34, %v177_v26  ;;  %v433_v7 = vsel %vm48_vm0, %v1659_v47, -inf }
 0x16a   :  { %v1642_v39 = vmul.f32 %v1609_v15, %v1631_v32  ;;  %v388_v40 = vmax.f32 %v338_v33, 0.0 }
 0x16b   :  { %v1655_v44 = vmul.f32 %v1609_v15, %v1633_v35  ;;  %v387_v45 = vmax.f32 %v333_v36, 0.0  ;;  %v1130_v46 = vpop.f32.mrb[8].mxu1 }
 0x16c   :  { %v437_v48 = vsel %vm48_vm0, %v1642_v39, -inf  ;;  %v1663_v49 = vadd.f32 1e-07, %v388_v40  ;;  %v348_v50 = vadd.f32 %v1130_v46, %v180_v37  ;;  %v342_v51 = vpop.f32.mrb[9].mxu1 }
 0x16d   :  { %v438_v52 = vmax.f32 %v432_v38, %v437_v48  ;;  %v435_v53 = vsel %vm48_vm0, %v1655_v44, -inf  ;;  %v1667_v54 = vadd.f32 1e-07, %v387_v45  ;;  %v343_v55 = vadd.f32 %v342_v51, %v179_v41 }
 0x16e   :  { %v436_v61 = vmax.f32 %v431_v42, %v435_v53  ;;  %v1674_v62 = vmul.f32 %v1609_v15, %v1663_v49  ;;  %v390_v63 = vmax.f32 %v348_v50, 0.0  ;;  %v186_v42 = vld [vmem:[%s1895_s5 + $0x78] sm:$0xff]  ;;  %v185_v50 = vld [vmem:[%s1895_s5 + $0x70] sm:$0xff] }
 0x16f   :  { %v1683_v2 = vmul.f32 %v1609_v15, %v1667_v54  ;;  %v389_v3 = vmax.f32 %v343_v55, 0.0  ;;  %v1133_v4 = vpop.f32.mrb[10].mxu1 }
 0x170   :  { %v441_v8 = vsel %vm48_vm0, %v1674_v62, -inf  ;;  %v1689_v9 = vadd.f32 1e-07, %v390_v63  ;;  %v358_v10 = vadd.f32 %v1133_v4, %v182_v60  ;;  %v352_v11 = vpop.f32.mrb[11].mxu1 }
 0x171   :  { %v442_v12 = vmax.f32 %v434_v1, %v441_v8  ;;  %v439_v14 = vsel %vm48_vm0, %v1683_v2, -inf  ;;  %v1693_v17 = vadd.f32 1e-07, %v389_v3  ;;  %v353_v18 = vadd.f32 %v352_v11, %v181_v0 }
 0x172   :  { %v440_v20 = vmax.f32 %v433_v7, %v439_v14  ;;  %v1700_v21 = vmul.f32 %v1609_v15, %v1689_v9  ;;  %v392_v22 = vmax.f32 %v358_v10, 0.0 }
 0x173   :  { %v1707_v25 = vmul.f32 %v1609_v15, %v1693_v17  ;;  %v391_v26 = vmax.f32 %v353_v18, 0.0  ;;  %v1136_v29 = vpop.f32.mrb[12].mxu1 }
 0x174   :  { %v445_v30 = vsel %vm48_vm0, %v1700_v21, -inf  ;;  %v1711_v33 = vadd.f32 1e-07, %v392_v22  ;;  %v368_v34 = vadd.f32 %v1136_v29, %v184_v19  ;;  %v362_v36 = vpop.f32.mrb[13].mxu1 }
 0x175   :  { %v446_v37 = vmax.f32 %v438_v52, %v445_v30  ;;  %v443_v38 = vsel %vm48_vm0, %v1707_v25, -inf  ;;  %v1715_v40 = vadd.f32 1e-07, %v391_v26  ;;  %v363_v41 = vadd.f32 %v362_v36, %v183_v23 }
 0x176   :  { %v444_v45 = vmax.f32 %v436_v61, %v443_v38  ;;  %v1722_v46 = vmul.f32 %v1609_v15, %v1711_v33  ;;  %v394_v48 = vmax.f32 %v368_v34, 0.0 }
 0x177   :  { %v1729_v51 = vmul.f32 %v1609_v15, %v1715_v40  ;;  %v393_v52 = vmax.f32 %v363_v41, 0.0  ;;  %v1139_v53 = vpop.f32.mrb[14].mxu1 }
 0x178   :  { %v449_v55 = vsel %vm48_vm0, %v1722_v46, -inf  ;;  %v1733_v60 = vadd.f32 1e-07, %v394_v48  ;;  %v378_v61 = vadd.f32 %v1139_v53, %v186_v42  ;;  %v372_v63 = vpop.f32.mrb[15].mxu1 }
 0x179   :  { %v450_v0 = vmax.f32 %v442_v12, %v449_v55  ;;  %v447_v1 = vsel %vm48_vm0, %v1729_v51, -inf  ;;  %v1737_v3 = vadd.f32 1e-07, %v393_v52  ;;  %v373_v4 = vadd.f32 %v372_v63, %v185_v50  ;;  %v468_v55 = vld [vmem:[#allocation2] sm:$0x1] }
 0x17a   :  { %v448_v7 = vmax.f32 %v440_v20, %v447_v1  ;;  %v1741_v8 = vmul.f32 %v1609_v15, %v1733_v60  ;;  %v396_v10 = vmax.f32 %v378_v61, 0.0  ;;  %v476_v63 = vsub.s32 0, %v1570_v56  ;;  %v749_v56 = vld [vmem:[%s1897_s6] sm:$0xff] }
 0x17b   :  { %v1745_v11 = vmul.f32 %v1609_v15, %v1737_v3  ;;  %v395_v14 = vmax.f32 %v373_v4, 0.0 }
 0x17c   :  { %v453_v12 = vsel %vm48_vm0, %v1741_v8, -inf  ;;  %v1749_v18 = vadd.f32 1e-07, %v396_v10 }
 0x17d   :  { %v454_v19 = vmax.f32 %v446_v37, %v453_v12  ;;  %v451_v22 = vsel %vm48_vm0, %v1745_v11, -inf  ;;  %v1753_v20 = vadd.f32 1e-07, %v395_v14 }
 0x17e   :  { %v452_v23 = vmax.f32 %v444_v45, %v451_v22  ;;  %v1757_v26 = vmul.f32 %v1609_v15, %v1749_v18 }
 0x17f   :  { %v428_v29 = vmul.f32 %v1609_v15, %v1753_v20 }
 0x180   :  { %v459_v30 = vmax.f32 %v452_v23, %v454_v19  ;;  %v457_v34 = vsel %vm48_vm0, %v1757_v26, -inf }
 0x181   :  { %v458_v36 = vmax.f32 %v450_v0, %v457_v34  ;;  %v455_v37 = vsel %vm48_vm0, %v428_v29, -inf }
 0x182   :  { %v456_v38 = vmax.f32 %v448_v7, %v455_v37 }
 0x184   :  { %v460_v41 = vmax.f32 %v456_v38, %v458_v36 }
 0x186   :  { %v461_v42 = vmax.f32 %v459_v30, %v460_v41 }
 0x188   :  { %v462_v48 = vrot.slane %v461_v42, 4 }
 0x18a   :  { %v463_v50 = vmax.f32 %v461_v42, %v462_v48 }
 0x18c   :  { %v464_v45 = vrot.slane %v463_v50, 2 }
 0x18e   :  { %v465_v52 = vmax.f32 %v463_v50, %v464_v45 }
 0x190   :  { %v466_v53 = vrot.slane %v465_v52, 1 }
 0x192   :  { %v467_v61 = vmax.f32 %v465_v52, %v466_v53 }
 0x194   :  { %v469_v15 = vmax.f32 %v468_v55, %v467_v61 }
 0x196   :  { %v477_v1 = vrot.slane %v469_v15, %v476_v63  ;;  %729 = vst.msk [vmem:[#allocation2] sm:$0x1] %vm46_vm4, %v469_v15  ;;  %v470_v0 = vsub.f32 %v468_v55, %v469_v15 }
 0x198   :  { %v493_v4 = vsub.f32 %v428_v29, %v477_v1  ;;  %v479_v7 = vsub.f32 %v1625_v27, %v477_v1  ;;  %v480_v10 = vsub.f32 %v1618_v24, %v477_v1  ;;  %v481_v14 = vsub.f32 %v1659_v47, %v477_v1 }
 0x199   :  { %v482_v12 = vsub.f32 %v1651_v43, %v477_v1  ;;  %v483_v19 = vsub.f32 %v1655_v44, %v477_v1  ;;  %v484_v22 = vsub.f32 %v1642_v39, %v477_v1  ;;  %v485_v23 = vsub.f32 %v1683_v2, %v477_v1 }
 0x19a   :  { %v523_v30 = vmul.f32 1.442695, %v493_v4  ;;  %v495_v34 = vmul.f32 1.442695, %v479_v7  ;;  %v497_v36 = vmul.f32 1.442695, %v480_v10  ;;  %v486_v37 = vsub.f32 %v1674_v62, %v477_v1 }
 0x19b   :  { %v499_v29 = vmul.f32 1.442695, %v481_v14  ;;  %v487_v27 = vsub.f32 %v1707_v25, %v477_v1  ;;  %v501_v24 = vmul.f32 1.442695, %v482_v12  ;;  %v503_v38 = vmul.f32 1.442695, %v483_v19 }
 0x19c   :  { %1338 = vpow2.f32 %v523_v30  ;;  %v505_v47 = vmul.f32 1.442695, %v484_v22  ;;  %v488_v43 = vsub.f32 %v1700_v21, %v477_v1  ;;  %v489_v44 = vsub.f32 %v1729_v51, %v477_v1 }
 0x19d   :  { %1340 = vpow2.f32 %v495_v34  ;;  %v490_v39 = vsub.f32 %v1722_v46, %v477_v1  ;;  %v491_v2 = vsub.f32 %v1745_v11, %v477_v1  ;;  %v492_v41 = vsub.f32 %v1741_v8, %v477_v1 }
 0x19e   :  { %1342 = vpow2.f32 %v497_v36  ;;  %v507_v62 = vmul.f32 1.442695, %v485_v23  ;;  %v494_v25 = vsub.f32 %v1757_v26, %v477_v1  ;;  %v509_v42 = vmul.f32 1.442695, %v486_v37 }
 0x19f   :  { %1344 = vpow2.f32 %v499_v29  ;;  %v511_v48 = vmul.f32 1.442695, %v487_v27  ;;  %v513_v50 = vmul.f32 1.442695, %v488_v43  ;;  %v515_v21 = vmul.f32 1.442695, %v489_v44 }
 0x1a0   :  { %1346 = vpow2.f32 %v501_v24  ;;  %v517_v51 = vmul.f32 1.442695, %v490_v39  ;;  %v519_v46 = vmul.f32 1.442695, %v491_v2  ;;  %v521_v8 = vmul.f32 1.442695, %v492_v41 }
 0x1a1   :  { %1348 = vpow2.f32 %v503_v38  ;;  %v525_v52 = vmul.f32 1.442695, %v494_v25  ;;  %v471_v61 = vmul.f32 1.442695, %v470_v0 }
 0x1a2   :  { %1350 = vpow2.f32 %v505_v47 }
 0x1a3   :  { %1352 = vpow2.f32 %v507_v62 }
 0x1a4   :  { %1354 = vpow2.f32 %v509_v42 }
 0x1a5   :  { %1356 = vpow2.f32 %v511_v48 }
 0x1a6   :  { %v1783_v45 = vpop.eup %1338  ;;  %1358 = vpow2.f32 %v513_v50 }
 0x1a7   :  { %v1341_v11 = vpop.eup %1340  ;;  %v1787_v26 = vmul.f32 %v1783_v45, %v1753_v20  ;;  %1360 = vpow2.f32 %v515_v21 }
 0x1a8   :  { %v1343_v53 = vpop.eup %1342  ;;  %v633_v55 = vmul.f32 %v1341_v11, %v1611_v16  ;;  %1362 = vpow2.f32 %v517_v51  ;;  %v752_v51 = vld [vmem:[%s1897_s6 + $0x18] sm:$0xff] }
 0x1a9   :  { %v1345_v15 = vpop.eup %1344  ;;  %v1244_v1 = vpack.c.bf16 %v1343_v53, %v1341_v11  ;;  %v634_v4 = vmul.f32 %v1343_v53, %v1601_v13  ;;  %1364 = vpow2.f32 %v519_v46 }
 0x1aa   :  { %v1347_v7 = vpop.eup %1346  ;;  %v635_v10 = vmul.f32 %v1345_v15, %v1629_v31  ;;  %1366 = vpow2.f32 %v521_v8  ;;  %v629_v8 = vld [vmem:[#allocation4] sm:$0xff] }
 0x1ab   :  { %v1349_v14 = vpop.eup %1348  ;;  %1245 = vmatprep.subr.bf16.mxu1 %v1244_v1  ;;  %v1248_v20 = vpack.c.bf16 %v1347_v7, %v1345_v15  ;;  %v1276_v12 = vpack.c.bf16 %v634_v4, %v633_v55  ;;  %v636_v19 = vmul.f32 %v1347_v7, %v1627_v28  ;;  %1368 = vpow2.f32 %v525_v52 }
 0x1ac   :  { %v1351_v22 = vpop.eup %1350  ;;  %1247 = vmatpush3.bf16.msra.mxu1 %v1244_v1  ;;  %v637_v16 = vmul.f32 %v1349_v14, %v1633_v35  ;;  %1370 = vpow2.f32 %v471_v61 }
 0x1ad   :  { %v1353_v0 = vpop.eup %1352  ;;  %1249 = vmatprep.subr.bf16.mxu1 %v1248_v20  ;;  %1277 = vmatprep.subr.bf16.mxu0 %v1276_v12  ;;  %v1280_v13 = vpack.c.bf16 %v636_v19, %v635_v10  ;;  %v1252_v23 = vpack.c.bf16 %v1351_v22, %v1349_v14  ;;  %v638_v31 = vmul.f32 %v1351_v22, %v1631_v32 }
 0x1ae   :  { %v1355_v30 = vpop.eup %1354  ;;  %1279 = vmatpush3.bf16.msra.mxu0 %v1276_v12  ;;  %v639_v34 = vmul.f32 %v1353_v0, %v1667_v54 }
 0x1af   :  { %v1357_v36 = vpop.eup %1356  ;;  %1281 = vmatprep.subr.bf16.mxu0 %v1280_v13  ;;  %v1284_v28 = vpack.c.bf16 %v638_v31, %v637_v16  ;;  %v1256_v37 = vpack.c.bf16 %v1355_v30, %v1353_v0  ;;  %v640_v29 = vmul.f32 %v1355_v30, %v1663_v49 }
 0x1b0   :  { %v1359_v27 = vpop.eup %1358  ;;  %1251 = vmatpush3.bf16.msra.mxu1 %v1248_v20  ;;  %v641_v35 = vmul.f32 %v1357_v36, %v1693_v17 }
 0x1b1   :  { %v1361_v24 = vpop.eup %1360  ;;  %1253 = vmatprep.subr.bf16.mxu1 %v1252_v23  ;;  %v1288_v38 = vpack.c.bf16 %v640_v29, %v639_v34  ;;  %v1260_v47 = vpack.c.bf16 %v1359_v27, %v1357_v36  ;;  %v642_v32 = vmul.f32 %v1359_v27, %v1689_v9  ;;  %v1034_v36 = vld [vmem:[%s1898_s7] ss:$0 sm:$0xff] }
 0x1b2   :  { %v1363_v43 = vpop.eup %1362  ;;  %1283 = vmatpush3.bf16.msra.mxu0 %v1280_v13  ;;  %v643_v54 = vmul.f32 %v1361_v24, %v1715_v40 }
 0x1b3   :  { %v1365_v44 = vpop.eup %1364  ;;  %1285 = vmatprep.subr.bf16.mxu0 %v1284_v28  ;;  %v1292_v39 = vpack.c.bf16 %v642_v32, %v641_v35  ;;  %v1264_v2 = vpack.c.bf16 %v1363_v43, %v1361_v24  ;;  %v644_v49 = vmul.f32 %v1363_v43, %v1711_v33 }
 0x1b4   :  { %v1367_v41 = vpop.eup %1366  ;;  %1255 = vmatpush3.bf16.msra.mxu1 %v1252_v23  ;;  %v645_v17 = vmul.f32 %v1365_v44, %v1737_v3 }
 0x1b5   :  { %v1369_v62 = vpop.eup %1368  ;;  %1257 = vmatprep.subr.bf16.mxu1 %v1256_v37  ;;  %v1296_v25 = vpack.c.bf16 %v644_v49, %v643_v54  ;;  %v1268_v42 = vpack.c.bf16 %v1367_v41, %v1365_v44  ;;  %v646_v9 = vmul.f32 %v1367_v41, %v1733_v60  ;;  %v750_v60 = vld [vmem:[%s1897_s6 + $0x8] sm:$0xff]  ;;  %v889_v49 = vld [vmem:[%s1899_s10] sm:$0xff] }
 0x1b6   :  { %v1371_v48 = vpop.eup %1370  ;;  %1287 = vmatpush3.bf16.msra.mxu0 %v1284_v28  ;;  %v1272_v40 = vpack.c.bf16 %v1369_v62, %v1783_v45  ;;  %v648_v50 = vmul.f32 %v1369_v62, %v1749_v18  ;;  %v751_v18 = vld [vmem:[%s1897_s6 + $0x10] sm:$0xff]  ;;  %v890_v41 = vld [vmem:[%s1899_s10 + $0x8] sm:$0xff] }
 0x1b7   :  { %1289 = vmatprep.subr.bf16.mxu0 %v1288_v38  ;;  %v1300_v21 = vpack.c.bf16 %v646_v9, %v645_v17  ;;  %v546_v33 = vrot.slane %v1371_v48, %v476_v63  ;;  %v1308_v63 = vpack.c.bf16 %v750_v60, %v749_v56  ;;  %v1312_v46 = vpack.c.bf16 %v752_v51, %v751_v18  ;;  %v891_v17 = vld [vmem:[%s1899_s10 + $0x10] sm:$0xff]  ;;  %v893_v9 = vld [vmem:[%s1899_s10 + $0x20] sm:$0xff]  ;;  %v894_v48 = vld [vmem:[%s1899_s10 + $0x28] sm:$0xff] }
 0x1b8   :  { %1259 = vmatpush3.bf16.msra.mxu1 %v1256_v37  ;;  %v1304_v3 = vpack.c.bf16 %v648_v50, %v1787_v26  ;;  %v1316_v62 = vpack.c.bf16 %v890_v41, %v889_v49  ;;  %v895_v50 = vld [vmem:[%s1899_s10 + $0x30] sm:$0xff] }
 0x1b9   :  { %1261 = vmatprep.subr.bf16.mxu1 %v1260_v47  ;;  %v549_v45 = vmul.f32 %v546_v33, %v541_v57  ;;  %v548_v26 = vmul.f32 %v546_v33, %v540_v58  ;;  %v631_v1 = vmul.f32 %v629_v8, %v546_v33  ;;  %v1037_v57 = vld [vmem:[%s1900_s8] ss:$0 sm:$0xff] }
 0x1ba   :  { %1291 = vmatpush3.bf16.msra.mxu0 %v1288_v38 }
 0x1bb   :  { %1293 = vmatprep.subr.bf16.mxu0 %v1292_v39 }
 0x1bc   :  { %1263 = vmatpush3.bf16.msra.mxu1 %v1260_v47 }
 0x1bd   :  { %1265 = vmatprep.subr.bf16.mxu1 %v1264_v2 }
 0x1be   :  { %1295 = vmatpush3.bf16.msra.mxu0 %v1292_v39 }
 0x1bf   :  { %1297 = vmatprep.subr.bf16.mxu0 %v1296_v25 }
 0x1c0   :  { %1267 = vmatpush3.bf16.msra.mxu1 %v1264_v2 }
 0x1c1   :  { %1269 = vmatprep.subr.bf16.mxu1 %v1268_v42 }
 0x1c2   :  { %1299 = vmatpush3.bf16.msra.mxu0 %v1296_v25  ;;  %v892_v25 = vld [vmem:[%s1899_s10 + $0x18] sm:$0xff] }
 0x1c3   :  { %1301 = vmatprep.subr.bf16.mxu0 %v1300_v21 }
 0x1c4   :  { %1271 = vmatpush3.bf16.msra.mxu1 %v1268_v42  ;;  %v1320_v42 = vpack.c.bf16 %v892_v25, %v891_v17 }
 0x1c5   :  { %1273 = vmatprep.subr.bf16.mxu1 %v1272_v40 }
 0x1c6   :  { %1303 = vmatpush3.bf16.msra.mxu0 %v1300_v21  ;;  %v896_v21 = vld [vmem:[%s1899_s10 + $0x38] sm:$0xff] }
 0x1c7   :  { %1305 = vmatprep.subr.bf16.mxu0 %v1304_v3 }
 0x1c8   :  { %1275 = vmatpush3.bf16.msra.mxu1 %v1272_v40  ;;  %v1324_v40 = vpack.c.bf16 %v894_v48, %v893_v9 }
 0x1c9   :  { %1309 = vmatprep.subr.bf16.mxu1 %v1308_v63 }
 0x1ca   :  { %1307 = vmatpush3.bf16.msra.mxu0 %v1304_v3 }
 0x1cb   :  { %1173 = vmatmul.mubr.msk.f32.vlgmr.msra.gmra.mrb[16].mxu1 %vm535_vm1, %v1383_v59  ;;  %1317 = vmatprep.subr.bf16.mxu0 %v1316_v62 }
 0x1cc   :  { %1311 = vmatpush3.bf16.msra.mxu1 %v1308_v63 }
 0x1cd   :  { %1208 = vmatmul.mubr.msk.f32.vlgmr.msra.gmra.mrb[0].mxu0 %vm535_vm1, %v1383_v59  ;;  %1313 = vmatprep.subr.bf16.mxu1 %v1312_v46  ;;  %v630_v59 = vld [vmem:[#allocation4 + $0x8] sm:$0xff] }
 0x1ce   :  { %v632_v55 = vmul.f32 %v630_v59, %v546_v33  ;;  %1319 = vmatpush3.bf16.msra.mxu0 %v1316_v62  ;;  %v1328_v33 = vpack.c.bf16 %v896_v21, %v895_v50  ;;  %v1038_v59 = vld [vmem:[%s1901_s9] ss:$0 sm:$0xff] }
 0x1cf   :  { %1321 = vmatprep.subr.bf16.mxu0 %v1320_v42 }
 0x1d0   :  { %1315 = vmatpush3.bf16.msra.mxu1 %v1312_v46 }
 0x1d2   :  { %1323 = vmatpush3.bf16.msra.mxu0 %v1320_v42 }
 0x1d3   :  { %1325 = vmatprep.subr.bf16.mxu0 %v1324_v40 }
 0x1d6   :  { %1327 = vmatpush3.bf16.msra.mxu0 %v1324_v40 }
 0x1d7   :  { %1329 = vmatprep.subr.bf16.mxu0 %v1328_v33 }
 0x1da   :  { %1331 = vmatpush3.bf16.msra.mxu0 %v1328_v33 }
 0x29e   :  { %v1174_v11 = vpop.f32.mrb[16].mxu1 }
 0x29f   :  { %v626_v52 = vadd.f32 %v1174_v11, %v549_v45  ;;  %v616_v53 = vpop.f32.mrb[17].mxu1 }
 0x2a0   :  { %v625_v61 = vadd.f32 %v616_v53, %v548_v26  ;;  %v1209_v15 = vpop.f32.mrb[0].mxu0 }
 0x2a1   :  { %628 = vst.msk [vmem:[#allocation3 + $0x8] sm:$0xff] %vm48_vm0, %v626_v52  ;;  %v725_v4 = vadd.f32 %v1209_v15, %v632_v55  ;;  %v715_v7 = vpop.f32.mrb[1].mxu0  ;;  %v1039_v15 = vld [vmem:[%s1902_s11] ss:$0 sm:$0xff] }
 0x2a2   :  { %627 = vst.msk [vmem:[#allocation3] sm:$0xff] %vm48_vm0, %v625_v61  ;;  %v724_v10 = vadd.f32 %v715_v7, %v631_v1 }
 0x2a3   :  { %727 = vst.msk [vmem:[#allocation4 + $0x8] sm:$0xff] %vm48_vm0, %v725_v4  ;;  %v986_v4 = vld [vmem:[%s1903_s2 + $0x8] sm:$0xff] }
 0x2a4   :  { %726 = vst.msk [vmem:[#allocation4] sm:$0xff] %vm48_vm0, %v724_v10 }
 0x2a8   :  { %v734_v14 = vld [vmem:[#allocation3 + $0x8] sm:$0xff] }
 0x2a9   :  { %v733_v20 = vld [vmem:[#allocation3] sm:$0xff]  ;;  %vm736_vm6 = vcmp.gt.f32.partialorder %v734_v14, 0.0 }
 0x2aa   :  { %vm735_vm7 = vcmp.gt.f32.partialorder %v733_v20, 0.0  ;;  %v738_v12 = vsel %vm736_vm6, %v734_v14, 1.0  ;;  %v740_v16 = vld [vmem:[#allocation4 + $0x8] sm:$0xff] }
 0x2ab   :  { %v737_v19 = vsel %vm735_vm7, %v733_v20, 1.0  ;;  %1372 = vrcp.f32 %v738_v12  ;;  %v739_v13 = vld [vmem:[#allocation4] sm:$0xff]  ;;  %v985_v14 = vld [vmem:[%s1903_s2] sm:$0xff] }
 0x2ac   :  { %1374 = vrcp.f32 %v737_v19 }
 0x2b5   :  { %v1373_v22 = vpop.eup %1372 }
 0x2b6   :  { %v1375_v0 = vpop.eup %1374  ;;  %v744_v23 = vmul.f32 %v1373_v22, %v740_v16 }
 0x2b7   :  { %v743_v31 = vmul.f32 %v1375_v0, %v739_v13 }
 0x2b8   :  { %v748_v34 = vadd.f32 %v744_v23, %v1469_v6 }
 0x2b9   :  { %v747_v30 = vadd.f32 %v743_v31, %v1464_v5 }
 0x2bb   :  { %1218 = vmatprep.mubr.msk.f32.mxu1 %vm48_vm0, %v747_v30 }
 0x2bc   :  { %1219 = vmatmul.mubr.msk.f32.vlgmr.msra.gmra.mrb[18].mxu1 %vm48_vm0, %v748_v34 }
 0x38f   :  { %v1220_v28 = vpop.f32.mrb[18].mxu1 }
 0x390   :  { %v838_v37 = vadd.f32 %v1220_v28, %v1034_v36  ;;  %v832_v29 = vpop.f32.mrb[19].mxu1 }
 0x391   :  { %v833_v27 = vadd.f32 %v1034_v36, %v832_v29 }
 0x392   :  { %v845_v35 = vsel %vm841_vm8, %v838_v37, 0.0 }
 0x393   :  { %846 = vadd.xlane.f32.xlu1 %v845_v35  ;;  %v842_v5 = vsel %vm841_vm8, %v833_v27, 0.0 }
 0x394   :  { %843 = vadd.xlane.f32.xlu0 %v842_v5 }
 0x420   :  { %v847_v6 = vpop.xlane.xlu1 %846 }
 0x421   :  { %v850_v24 = vmul.f32 0.015625, %v847_v6  ;;  %v844_v38 = vpop.xlane.xlu0 %843 }
 0x422   :  { %v849_v47 = vmul.f32 0.015625, %v844_v38 }
 0x423   :  { %v852_v32 = vsub.f32 %v838_v37, %v850_v24 }
 0x424   :  { %v851_v43 = vsub.f32 %v833_v27, %v849_v47 }
 0x425   :  { %v854_v39 = vmul.f32 %v852_v32, %v852_v32 }
 0x426   :  { %v853_v54 = vmul.f32 %v851_v43, %v851_v43 }
 0x427   :  { %v858_v2 = vsel %vm841_vm8, %v854_v39, 0.0 }
 0x428   :  { %v855_v44 = vsel %vm841_vm8, %v853_v54, 0.0 }
 0x429   :  { %856 = vadd.xlane.f32.xlu0 %v855_v44 }
 0x42d   :  { %859 = vadd.xlane.f32.xlu0 %v858_v2 }
 0x4b6   :  { %v857_v3 = vpop.xlane.xlu0 %856 }
 0x4b7   :  { %v861_v56 = vmul.f32 0.015625, %v857_v3 }
 0x4b9   :  { %v863_v60 = vadd.f32 1e-05, %v861_v56 }
 0x4ba   :  { %v860_v18 = vpop.xlane.xlu0 %859 }
 0x4bb   :  { %1376 = vrsqrt.f32 %v863_v60  ;;  %v862_v63 = vmul.f32 0.015625, %v860_v18 }
 0x4bd   :  { %v864_v51 = vadd.f32 1e-05, %v862_v63 }
 0x4bf   :  { %1378 = vrsqrt.f32 %v864_v51 }
 0x4c5   :  { %v1377_v46 = vpop.eup %1376 }
 0x4c6   :  { %v867_v58 = vmul.f32 %v1377_v46, %v851_v43 }
 0x4c8   :  { %v876_v45 = vmul.f32 %v1037_v57, %v867_v58 }
 0x4c9   :  { %v1379_v8 = vpop.eup %1378 }
 0x4ca   :  { %v868_v11 = vmul.f32 %v1379_v8, %v852_v32  ;;  %v885_v26 = vadd.f32 %v1038_v59, %v876_v45 }
 0x4cc   :  { %v877_v52 = vmul.f32 %v1037_v57, %v868_v11  ;;  %v887_v53 = vmax.f32 %v885_v26, 0.0 }
 0x4ce   :  { %v886_v55 = vadd.f32 %v1038_v59, %v877_v52  ;;  %1237 = vmatprep.mubr.msk.f32.mxu0 %vm841_vm8, %v887_v53 }
 0x4d0   :  { %v888_v61 = vmax.f32 %v886_v55, 0.0 }
 0x4d2   :  { %1238 = vmatmul.mubr.msk.f32.vlgmr.msra.gmra.mrb[2].mxu0 %vm841_vm8, %v888_v61 }
 0x5a5   :  { %v1239_v1 = vpop.f32.mrb[2].mxu0 }
 0x5a6   :  { %v982_v7 = vadd.f32 %v1239_v1, %v1039_v15  ;;  %v976_v10 = vpop.f32.mrb[3].mxu0 }
 0x5a7   :  { %v977_v20 = vadd.f32 %v1039_v15, %v976_v10 }
 0x5a8   :  { %v988_v12 = vadd.f32 %v986_v4, %v982_v7 }
 0x5a9   :  { %v987_v19 = vadd.f32 %v985_v14, %v977_v20 }
 0x5aa   :  { %990 = vst.msk [vmem:[%s1904_s12 + $0x8] sm:$0xff] %vm48_vm0, %v988_v12 }
 0x5ab   :  { %989 = vst.msk [vmem:[%s1904_s12] sm:$0xff] %vm48_vm0, %v987_v19 }

// kernel: graph_encoder_forward.7
= control target key start
LH: loop header
LB: loop body
LE: loop exit
PB: predicated region body
PF: predicated region fallthrough
CT: control target
= control target key end

     0   :  { %v1376_v0 = vmov 0   ;;  %vm48_vm0 = vcmask 261120   ;;  %v1377_v20 = vmov 0.0   ;;  %v71_v21 = vlaneseq  ;;  %s1882_s3 = inlined_call_operand.vmem [shape: s32[128,1], index: 3, kind: input, shape index: {}]   ;;  %s1883_s2 = inlined_call_operand.vmem [shape: f32[16,32], index: 2, kind: input, shape index: {}, may-alias: {1,2}]   ;;  %s1884_s1 = inlined_call_operand.vmem [shape: f32[16,32], index: 1, kind: input, shape index: {}, may-alias: {1,2}]   ;;  %s1885_s4 = inlined_call_operand.vmem [shape: s32[1,128], index: 4, kind: input, shape index: {}]   ;;  %s1886_s5 = inlined_call_operand.vmem [shape: f32[128,32], index: 5, kind: input, shape index: {}]   ;;  %s1887_s0 = inlined_call_operand.<no memory space> [shape: f32[1,1], index: 0, kind: input, shape index: {}]   ;;  %s1888_s6 = inlined_call_operand.vmem [shape: f32[32,64], index: 6, kind: input, shape index: {}]   ;;  %s1889_s7 = inlined_call_operand.vmem [shape: f32[1,64], index: 7, kind: input, shape index: {}]   ;;  %s1890_s10 = inlined_call_operand.vmem [shape: f32[64,32], index: 10, kind: input, shape index: {}]   ;;  %s1891_s8 = inlined_call_operand.vmem [shape: f32[1,64], index: 8, kind: input, shape index: {}]   ;;  %s1892_s9 = inlined_call_operand.vmem [shape: f32[1,64], index: 9, kind: input, shape index: {}]   ;;  %s1893_s11 = inlined_call_operand.vmem [shape: f32[1,32], index: 11, kind: input, shape index: {}]   ;;  %s1894_s12 = inlined_call_operand.vmem [shape: f32[16,32], index: 12, kind: output, shape index: {}]  }
   0x1   :  { %1333 = vset.pattern.permute.xlu1 %v1376_v0  ;;  %1332 = vset.pattern.permute.xlu0 %v1376_v0  ;;  %v56_v1 = vld [vmem:[%s1882_s3 + $0x10] sm:$0xff]  ;;  %v54_v2 = vld [vmem:[%s1882_s3] sm:$0xff]  ;;  %v57_v3 = vld [vmem:[%s1882_s3 + $0x18] sm:$0xff]  ;;  %49 = vst.msk [vmem:[#allocation3] sm:$0xff] %vm48_vm0, %v1377_v20  ;;  %vm187_vm1 = vcmask 130048   ;;  %v1379_v59 = vmov 1.0  }
   0x2   :  { %80 = vperm.xlu1 %1333, %v56_v1   ;;  %74 = vperm.xlu0 %1332, %v54_v2   ;;  %v55_v4 = vld [vmem:[%s1882_s3 + $0x8] sm:$0xff]  ;;  %v1460_v5 = vld [vmem:[%s1884_s1] sm:$0xff]  ;;  %v61_v10 = vld [vmem:[%s1882_s3 + $0x38] sm:$0xff]  ;;  %50 = vst.msk [vmem:[#allocation3 + $0x8] sm:$0xff] %vm48_vm0, %v1377_v20  ;;  %v1514_v22 = vand.u32 127, %v71_v21  ;;  %v1566_v56 = vshrl.u32 %v71_v21, 7 }
   0x3   :  { %v1465_v6 = vld [vmem:[%s1884_s1 + $0x8] sm:$0xff]  ;;  %v58_v8 = vld [vmem:[%s1882_s3 + $0x20] sm:$0xff]  ;;  %v60_v11 = vld [vmem:[%s1882_s3 + $0x30] sm:$0xff]  ;;  %51 = vst.msk [vmem:[#allocation4] sm:$0xff] %vm48_vm0, %v1377_v20  ;;  %v1378_v55 = vmov -1e+30  }
   0x4   :  { %v59_v7 = vld [vmem:[%s1882_s3 + $0x28] sm:$0xff]  ;;  %v1236_v9 = vpack.c.bf16 %v1465_v6, %v1460_v5  ;;  %v62_v13 = vld [vmem:[%s1882_s3 + $0x40] sm:$0xff]  ;;  %v65_v14 = vld [vmem:[%s1882_s3 + $0x58] sm:$0xff]  ;;  %52 = vst.msk [vmem:[#allocation4 + $0x8] sm:$0xff] %vm48_vm0, %v1377_v20  ;;  %v1569_v57 = vadd.s32 8, %v1566_v56 }
   0x5   :  { %v63_v12 = vld [vmem:[%s1882_s3 + $0x48] sm:$0xff]  ;;  %v64_v15 = vld [vmem:[%s1882_s3 + $0x50] sm:$0xff]  ;;  %v66_v17 = vld [vmem:[%s1882_s3 + $0x60] sm:$0xff] }
   0x6   :  { %83 = vperm.xlu1 %1333, %v57_v3   ;;  %77 = vperm.xlu0 %1332, %v55_v4   ;;  %v67_v16 = vld [vmem:[%s1882_s3 + $0x68] sm:$0xff]  ;;  %v69_v18 = vld [vmem:[%s1882_s3 + $0x78] sm:$0xff]  ;;  %v68_v19 = vld [vmem:[%s1882_s3 + $0x70] sm:$0xff] }
   0x7   :  { %1237 = vmatprep.subr.bf16.mxu1 %v1236_v9  ;;  %v1574_v58 = vld [vmem:[%s1885_s4] ss:$0 sm:$0xff]  ;;  %v172_v60 = vld [vmem:[%s1886_s5 + $0x8] sm:$0xff]  ;;  %v174_v2 = vld [vmem:[%s1886_s5 + $0x18] sm:$0xff] }
   0x8   :  { %1239 = vmatpush3.bf16.msra.mxu1 %v1236_v9  ;;  %v171_v61 = vld [vmem:[%s1886_s5] sm:$0xff]  ;;  %v173_v4 = vld [vmem:[%s1886_s5 + $0x10] sm:$0xff] }
   0xa   :  { %89 = vperm.xlu1 %1333, %v59_v7   ;;  %86 = vperm.xlu0 %1332, %v58_v8  }
   0xe   :  { %95 = vperm.xlu1 %1333, %v61_v10   ;;  %92 = vperm.xlu0 %1332, %v60_v11  }
  0x12   :  { %101 = vperm.xlu1 %1333, %v63_v12   ;;  %98 = vperm.xlu0 %1332, %v62_v13   ;;  %v176_v12 = vld [vmem:[%s1886_s5 + $0x28] sm:$0xff] }
  0x16   :  { %107 = vperm.xlu1 %1333, %v65_v14   ;;  %104 = vperm.xlu0 %1332, %v64_v15   ;;  %v175_v14 = vld [vmem:[%s1886_s5 + $0x20] sm:$0xff]  ;;  %v1605_v15 = vstv %s1887_s0 }
  0x1a   :  { %113 = vperm.xlu1 %1333, %v67_v16   ;;  %110 = vperm.xlu0 %1332, %v66_v17  }
  0x1e   :  { %119 = vperm.xlu1 %1333, %v69_v18   ;;  %116 = vperm.xlu0 %1332, %v68_v19  }
  0x81   :  { %v81_v23 = vpop.permute.xlu1 %80  ;;  %v75_v24 = vpop.permute.xlu0 %74 }
  0x82   :  { %vm121_vm2 = vcmp.eq.s32.totalorder %v1514_v22, %v75_v24  ;;  %vm123_vm3 = vcmp.eq.s32.totalorder %v1514_v22, %v81_v23  ;;  %v178_v23 = vld [vmem:[%s1886_s5 + $0x38] sm:$0xff] }
  0x83   :  { %v991_v25 = vsel %vm121_vm2, 1.0, %v1377_v20  ;;  %v993_v28 = vsel %vm123_vm3, 1.0, %v1377_v20 }
  0x84   :  { %1112 = vmatprep.mubr.msk.f32.mxu1 %vm187_vm1, %v991_v25 }
  0x85   :  { %v84_v26 = vpop.permute.xlu1 %83  ;;  %v78_v27 = vpop.permute.xlu0 %77 }
  0x86   :  { %vm122_vm4 = vcmp.eq.s32.totalorder %v1514_v22, %v78_v27  ;;  %vm124_vm5 = vcmp.eq.s32.totalorder %v1514_v22, %v84_v26  ;;  %v177_v26 = vld [vmem:[%s1886_s5 + $0x30] sm:$0xff] }
  0x87   :  { %v992_v29 = vsel %vm122_vm4, 1.0, %v1377_v20  ;;  %v994_v32 = vsel %vm124_vm5, 1.0, %v1377_v20  ;;  %vm46_vm4 = vcmask 253952   ;;  %vm534_vm5 = vcmp.eq.s32.totalorder %v1566_v56, %v1574_v58 }
  0x88   :  { %1113 = vmatmul.mubr.msk.f32.vlgmr.msra.gmra.mrb[0].mxu1 %vm187_vm1, %v992_v29  ;;  %47 = vst.msk [vmem:[#allocation2] sm:$0x1] %vm46_vm4, %v1378_v55  ;;  %1203 = vmatprep.mubr.msk.f32.mxu0 %vm534_vm5, %v1379_v59 }
  0x89   :  { %v90_v30 = vpop.permute.xlu1 %89  ;;  %v87_v31 = vpop.permute.xlu0 %86  ;;  %1115 = vmatprep.mubr.msk.f32.mxu1 %vm187_vm1, %v993_v28 }
  0x8a   :  { %vm125_vm6 = vcmp.eq.s32.totalorder %v1514_v22, %v87_v31  ;;  %vm126_vm7 = vcmp.eq.s32.totalorder %v1514_v22, %v90_v30 }
  0x8b   :  { %v995_v33 = vsel %vm125_vm6, 1.0, %v1377_v20  ;;  %v996_v36 = vsel %vm126_vm7, 1.0, %v1377_v20 }
  0x8c   :  { %1116 = vmatmul.mubr.msk.f32.gmra.mrb[2].mxu1 %vm187_vm1, %v994_v32 }
  0x8d   :  { %v96_v34 = vpop.permute.xlu1 %95  ;;  %v93_v35 = vpop.permute.xlu0 %92  ;;  %1118 = vmatprep.mubr.msk.f32.mxu1 %vm187_vm1, %v995_v33 }
  0x8e   :  { %vm127_vm8 = vcmp.eq.s32.totalorder %v1514_v22, %v93_v35  ;;  %vm128_vm9 = vcmp.eq.s32.totalorder %v1514_v22, %v96_v34 }
  0x8f   :  { %v997_v37 = vsel %vm127_vm8, 1.0, %v1377_v20  ;;  %v998_v40 = vsel %vm128_vm9, 1.0, %v1377_v20  ;;  %vm841_vm8 = vcmask 523264  }
  0x90   :  { %1119 = vmatmul.mubr.msk.f32.gmra.mrb[4].mxu1 %vm187_vm1, %v996_v36 }
  0x91   :  { %v102_v38 = vpop.permute.xlu1 %101  ;;  %v99_v39 = vpop.permute.xlu0 %98  ;;  %1121 = vmatprep.mubr.msk.f32.mxu1 %vm187_vm1, %v997_v37  ;;  %v180_v37 = vld [vmem:[%s1886_s5 + $0x48] sm:$0xff] }
  0x92   :  { %vm129_vm10 = vcmp.eq.s32.totalorder %v1514_v22, %v99_v39  ;;  %vm130_vm11 = vcmp.eq.s32.totalorder %v1514_v22, %v102_v38 }
  0x93   :  { %v999_v41 = vsel %vm129_vm10, 1.0, %v1377_v20  ;;  %v1000_v44 = vsel %vm130_vm11, 1.0, %v1377_v20 }
  0x94   :  { %1122 = vmatmul.mubr.msk.f32.gmra.mrb[6].mxu1 %vm187_vm1, %v998_v40 }
  0x95   :  { %v108_v42 = vpop.permute.xlu1 %107  ;;  %v105_v43 = vpop.permute.xlu0 %104  ;;  %1124 = vmatprep.mubr.msk.f32.mxu1 %vm187_vm1, %v999_v41  ;;  %v179_v41 = vld [vmem:[%s1886_s5 + $0x40] sm:$0xff] }
  0x96   :  { %vm131_vm12 = vcmp.eq.s32.totalorder %v1514_v22, %v105_v43  ;;  %vm132_vm13 = vcmp.eq.s32.totalorder %v1514_v22, %v108_v42 }
  0x97   :  { %v1001_v45 = vsel %vm131_vm12, 1.0, %v1377_v20  ;;  %v1002_v48 = vsel %vm132_vm13, 1.0, %v1377_v20 }
  0x98   :  { %1125 = vmatmul.mubr.msk.f32.gmra.mrb[8].mxu1 %vm187_vm1, %v1000_v44 }
  0x99   :  { %v114_v46 = vpop.permute.xlu1 %113  ;;  %v111_v47 = vpop.permute.xlu0 %110  ;;  %1127 = vmatprep.mubr.msk.f32.mxu1 %vm187_vm1, %v1001_v45 }
  0x9a   :  { %vm133_vm14 = vcmp.eq.s32.totalorder %v1514_v22, %v111_v47  ;;  %vm134_vm15 = vcmp.eq.s32.totalorder %v1514_v22, %v114_v46 }
  0x9b   :  { %v1003_v49 = vsel %vm133_vm14, 1.0, %v1377_v20  ;;  %v1004_v52 = vsel %vm134_vm15, 1.0, %v1377_v20 }
  0x9c   :  { %1128 = vmatmul.mubr.msk.f32.gmra.mrb[10].mxu1 %vm187_vm1, %v1002_v48 }
  0x9d   :  { %v120_v50 = vpop.permute.xlu1 %119  ;;  %v117_v51 = vpop.permute.xlu0 %116  ;;  %1130 = vmatprep.mubr.msk.f32.mxu1 %vm187_vm1, %v1003_v49 }
  0x9e   :  { %vm135_vm2 = vcmp.eq.s32.totalorder %v1514_v22, %v117_v51  ;;  %vm136_vm3 = vcmp.eq.s32.totalorder %v1514_v22, %v120_v50 }
  0x9f   :  { %v1005_v53 = vsel %vm135_vm2, 1.0, %v1377_v20  ;;  %v1006_v54 = vsel %vm136_vm3, 1.0, %v1377_v20 }
  0xa0   :  { %1131 = vmatmul.mubr.msk.f32.gmra.mrb[12].mxu1 %vm187_vm1, %v1004_v52 }
  0xa1   :  { %1133 = vmatprep.mubr.msk.f32.mxu1 %vm187_vm1, %v1005_v53 }
  0xa4   :  { %1134 = vmatmul.mubr.msk.f32.gmra.mrb[14].mxu1 %vm187_vm1, %v1006_v54  ;;  %vm535_vm1 = vcmp.eq.s32.totalorder %v1569_v57, %v1574_v58  ;;  %v541_v57 = vld [vmem:[#allocation3 + $0x8] sm:$0xff]  ;;  %v540_v58 = vld [vmem:[#allocation3] sm:$0xff] }
  0xa5   :  { %1168 = vmatprep.mubr.msk.f32.mxu1 %vm534_vm5, %v1379_v59 }
 0x15b   :  { %v1114_v62 = vpop.f32.mrb[0].mxu1 }
 0x15c   :  { %v308_v63 = vadd.f32 %v1114_v62, %v172_v60  ;;  %v302_v0 = vpop.f32.mrb[1].mxu1  ;;  %v182_v60 = vld [vmem:[%s1886_s5 + $0x58] sm:$0xff] }
 0x15d   :  { %v303_v1 = vadd.f32 %v302_v0, %v171_v61  ;;  %v181_v0 = vld [vmem:[%s1886_s5 + $0x50] sm:$0xff] }
 0x15e   :  { %v382_v3 = vmax.f32 %v308_v63, 0.0 }
 0x15f   :  { %v381_v7 = vmax.f32 %v303_v1, 0.0  ;;  %v1117_v8 = vpop.f32.mrb[2].mxu1 }
 0x160   :  { %v318_v9 = vadd.f32 %v1117_v8, %v174_v2  ;;  %v312_v10 = vpop.f32.mrb[3].mxu1  ;;  %v1597_v13 = vadd.f32 1e-07, %v382_v3 }
 0x161   :  { %v313_v11 = vadd.f32 %v312_v10, %v173_v4  ;;  %v1607_v16 = vadd.f32 1e-07, %v381_v7 }
 0x162   :  { %v384_v17 = vmax.f32 %v318_v9, 0.0  ;;  %v1614_v24 = vmul.f32 %v1605_v15, %v1597_v13 }
 0x163   :  { %v1120_v18 = vpop.f32.mrb[4].mxu1  ;;  %v383_v19 = vmax.f32 %v313_v11, 0.0  ;;  %v1621_v27 = vmul.f32 %v1605_v15, %v1607_v16 }
 0x164   :  { %v328_v20 = vadd.f32 %v1120_v18, %v176_v12  ;;  %v322_v21 = vpop.f32.mrb[5].mxu1  ;;  %v1623_v28 = vadd.f32 1e-07, %v384_v17  ;;  %v432_v38 = vsel %vm48_vm0, %v1614_v24, -inf }
 0x165   :  { %v323_v22 = vadd.f32 %v322_v21, %v175_v14  ;;  %v1625_v31 = vadd.f32 1e-07, %v383_v19  ;;  %v431_v42 = vsel %vm48_vm0, %v1621_v27, -inf  ;;  %v184_v19 = vld [vmem:[%s1886_s5 + $0x68] sm:$0xff] }
 0x166   :  { %v386_v25 = vmax.f32 %v328_v20, 0.0  ;;  %v1647_v43 = vmul.f32 %v1605_v15, %v1623_v28 }
 0x167   :  { %v385_v29 = vmax.f32 %v323_v22, 0.0  ;;  %v1123_v30 = vpop.f32.mrb[6].mxu1  ;;  %v1655_v47 = vmul.f32 %v1605_v15, %v1625_v31 }
 0x168   :  { %v1627_v32 = vadd.f32 1e-07, %v386_v25  ;;  %v338_v33 = vadd.f32 %v1123_v30, %v178_v23  ;;  %v332_v34 = vpop.f32.mrb[7].mxu1  ;;  %v434_v1 = vsel %vm48_vm0, %v1647_v43, -inf  ;;  %v183_v23 = vld [vmem:[%s1886_s5 + $0x60] sm:$0xff] }
 0x169   :  { %v1629_v35 = vadd.f32 1e-07, %v385_v29  ;;  %v333_v36 = vadd.f32 %v332_v34, %v177_v26  ;;  %v433_v7 = vsel %vm48_vm0, %v1655_v47, -inf }
 0x16a   :  { %v1638_v39 = vmul.f32 %v1605_v15, %v1627_v32  ;;  %v388_v40 = vmax.f32 %v338_v33, 0.0 }
 0x16b   :  { %v1651_v44 = vmul.f32 %v1605_v15, %v1629_v35  ;;  %v387_v45 = vmax.f32 %v333_v36, 0.0  ;;  %v1126_v46 = vpop.f32.mrb[8].mxu1 }
 0x16c   :  { %v437_v48 = vsel %vm48_vm0, %v1638_v39, -inf  ;;  %v1659_v49 = vadd.f32 1e-07, %v388_v40  ;;  %v348_v50 = vadd.f32 %v1126_v46, %v180_v37  ;;  %v342_v51 = vpop.f32.mrb[9].mxu1 }
 0x16d   :  { %v438_v52 = vmax.f32 %v432_v38, %v437_v48  ;;  %v435_v53 = vsel %vm48_vm0, %v1651_v44, -inf  ;;  %v1663_v54 = vadd.f32 1e-07, %v387_v45  ;;  %v343_v55 = vadd.f32 %v342_v51, %v179_v41 }
 0x16e   :  { %v436_v61 = vmax.f32 %v431_v42, %v435_v53  ;;  %v1670_v62 = vmul.f32 %v1605_v15, %v1659_v49  ;;  %v390_v63 = vmax.f32 %v348_v50, 0.0  ;;  %v186_v42 = vld [vmem:[%s1886_s5 + $0x78] sm:$0xff]  ;;  %v185_v50 = vld [vmem:[%s1886_s5 + $0x70] sm:$0xff] }
 0x16f   :  { %v1679_v2 = vmul.f32 %v1605_v15, %v1663_v54  ;;  %v389_v3 = vmax.f32 %v343_v55, 0.0  ;;  %v1129_v4 = vpop.f32.mrb[10].mxu1 }
 0x170   :  { %v441_v8 = vsel %vm48_vm0, %v1670_v62, -inf  ;;  %v1685_v9 = vadd.f32 1e-07, %v390_v63  ;;  %v358_v10 = vadd.f32 %v1129_v4, %v182_v60  ;;  %v352_v11 = vpop.f32.mrb[11].mxu1 }
 0x171   :  { %v442_v12 = vmax.f32 %v434_v1, %v441_v8  ;;  %v439_v14 = vsel %vm48_vm0, %v1679_v2, -inf  ;;  %v1689_v17 = vadd.f32 1e-07, %v389_v3  ;;  %v353_v18 = vadd.f32 %v352_v11, %v181_v0 }
 0x172   :  { %v440_v20 = vmax.f32 %v433_v7, %v439_v14  ;;  %v1696_v21 = vmul.f32 %v1605_v15, %v1685_v9  ;;  %v392_v22 = vmax.f32 %v358_v10, 0.0 }
 0x173   :  { %v1703_v25 = vmul.f32 %v1605_v15, %v1689_v17  ;;  %v391_v26 = vmax.f32 %v353_v18, 0.0  ;;  %v1132_v29 = vpop.f32.mrb[12].mxu1 }
 0x174   :  { %v445_v30 = vsel %vm48_vm0, %v1696_v21, -inf  ;;  %v1707_v33 = vadd.f32 1e-07, %v392_v22  ;;  %v368_v34 = vadd.f32 %v1132_v29, %v184_v19  ;;  %v362_v36 = vpop.f32.mrb[13].mxu1 }
 0x175   :  { %v446_v37 = vmax.f32 %v438_v52, %v445_v30  ;;  %v443_v38 = vsel %vm48_vm0, %v1703_v25, -inf  ;;  %v1711_v40 = vadd.f32 1e-07, %v391_v26  ;;  %v363_v41 = vadd.f32 %v362_v36, %v183_v23 }
 0x176   :  { %v444_v45 = vmax.f32 %v436_v61, %v443_v38  ;;  %v1718_v46 = vmul.f32 %v1605_v15, %v1707_v33  ;;  %v394_v48 = vmax.f32 %v368_v34, 0.0 }
 0x177   :  { %v1725_v51 = vmul.f32 %v1605_v15, %v1711_v40  ;;  %v393_v52 = vmax.f32 %v363_v41, 0.0  ;;  %v1135_v53 = vpop.f32.mrb[14].mxu1 }
 0x178   :  { %v449_v55 = vsel %vm48_vm0, %v1718_v46, -inf  ;;  %v1729_v60 = vadd.f32 1e-07, %v394_v48  ;;  %v378_v61 = vadd.f32 %v1135_v53, %v186_v42  ;;  %v372_v63 = vpop.f32.mrb[15].mxu1 }
 0x179   :  { %v450_v0 = vmax.f32 %v442_v12, %v449_v55  ;;  %v447_v1 = vsel %vm48_vm0, %v1725_v51, -inf  ;;  %v1733_v3 = vadd.f32 1e-07, %v393_v52  ;;  %v373_v4 = vadd.f32 %v372_v63, %v185_v50  ;;  %v468_v55 = vld [vmem:[#allocation2] sm:$0x1] }
 0x17a   :  { %v448_v7 = vmax.f32 %v440_v20, %v447_v1  ;;  %v1737_v8 = vmul.f32 %v1605_v15, %v1729_v60  ;;  %v396_v10 = vmax.f32 %v378_v61, 0.0  ;;  %v476_v63 = vsub.s32 0, %v1566_v56  ;;  %v749_v56 = vld [vmem:[%s1888_s6] sm:$0xff] }
 0x17b   :  { %v1741_v11 = vmul.f32 %v1605_v15, %v1733_v3  ;;  %v395_v14 = vmax.f32 %v373_v4, 0.0 }
 0x17c   :  { %v453_v12 = vsel %vm48_vm0, %v1737_v8, -inf  ;;  %v1745_v18 = vadd.f32 1e-07, %v396_v10 }
 0x17d   :  { %v454_v19 = vmax.f32 %v446_v37, %v453_v12  ;;  %v451_v22 = vsel %vm48_vm0, %v1741_v11, -inf  ;;  %v1749_v20 = vadd.f32 1e-07, %v395_v14 }
 0x17e   :  { %v452_v23 = vmax.f32 %v444_v45, %v451_v22  ;;  %v1753_v26 = vmul.f32 %v1605_v15, %v1745_v18 }
 0x17f   :  { %v428_v29 = vmul.f32 %v1605_v15, %v1749_v20 }
 0x180   :  { %v459_v30 = vmax.f32 %v452_v23, %v454_v19  ;;  %v457_v34 = vsel %vm48_vm0, %v1753_v26, -inf }
 0x181   :  { %v458_v36 = vmax.f32 %v450_v0, %v457_v34  ;;  %v455_v37 = vsel %vm48_vm0, %v428_v29, -inf }
 0x182   :  { %v456_v38 = vmax.f32 %v448_v7, %v455_v37 }
 0x184   :  { %v460_v41 = vmax.f32 %v456_v38, %v458_v36 }
 0x186   :  { %v461_v42 = vmax.f32 %v459_v30, %v460_v41 }
 0x188   :  { %v462_v48 = vrot.slane %v461_v42, 4 }
 0x18a   :  { %v463_v50 = vmax.f32 %v461_v42, %v462_v48 }
 0x18c   :  { %v464_v45 = vrot.slane %v463_v50, 2 }
 0x18e   :  { %v465_v52 = vmax.f32 %v463_v50, %v464_v45 }
 0x190   :  { %v466_v53 = vrot.slane %v465_v52, 1 }
 0x192   :  { %v467_v61 = vmax.f32 %v465_v52, %v466_v53 }
 0x194   :  { %v469_v15 = vmax.f32 %v468_v55, %v467_v61 }
 0x196   :  { %v477_v1 = vrot.slane %v469_v15, %v476_v63  ;;  %729 = vst.msk [vmem:[#allocation2] sm:$0x1] %vm46_vm4, %v469_v15  ;;  %v470_v0 = vsub.f32 %v468_v55, %v469_v15 }
 0x198   :  { %v493_v4 = vsub.f32 %v428_v29, %v477_v1  ;;  %v479_v7 = vsub.f32 %v1621_v27, %v477_v1  ;;  %v480_v10 = vsub.f32 %v1614_v24, %v477_v1  ;;  %v481_v14 = vsub.f32 %v1655_v47, %v477_v1 }
 0x199   :  { %v482_v12 = vsub.f32 %v1647_v43, %v477_v1  ;;  %v483_v19 = vsub.f32 %v1651_v44, %v477_v1  ;;  %v484_v22 = vsub.f32 %v1638_v39, %v477_v1  ;;  %v485_v23 = vsub.f32 %v1679_v2, %v477_v1 }
 0x19a   :  { %v523_v30 = vmul.f32 1.442695, %v493_v4  ;;  %v495_v34 = vmul.f32 1.442695, %v479_v7  ;;  %v497_v36 = vmul.f32 1.442695, %v480_v10  ;;  %v486_v37 = vsub.f32 %v1670_v62, %v477_v1 }
 0x19b   :  { %v499_v29 = vmul.f32 1.442695, %v481_v14  ;;  %v487_v27 = vsub.f32 %v1703_v25, %v477_v1  ;;  %v501_v24 = vmul.f32 1.442695, %v482_v12  ;;  %v503_v38 = vmul.f32 1.442695, %v483_v19 }
 0x19c   :  { %1334 = vpow2.f32 %v523_v30  ;;  %v505_v47 = vmul.f32 1.442695, %v484_v22  ;;  %v488_v43 = vsub.f32 %v1696_v21, %v477_v1  ;;  %v489_v44 = vsub.f32 %v1725_v51, %v477_v1 }
 0x19d   :  { %1336 = vpow2.f32 %v495_v34  ;;  %v490_v39 = vsub.f32 %v1718_v46, %v477_v1  ;;  %v491_v2 = vsub.f32 %v1741_v11, %v477_v1  ;;  %v492_v41 = vsub.f32 %v1737_v8, %v477_v1 }
 0x19e   :  { %1338 = vpow2.f32 %v497_v36  ;;  %v507_v62 = vmul.f32 1.442695, %v485_v23  ;;  %v494_v25 = vsub.f32 %v1753_v26, %v477_v1  ;;  %v509_v42 = vmul.f32 1.442695, %v486_v37 }
 0x19f   :  { %1340 = vpow2.f32 %v499_v29  ;;  %v511_v48 = vmul.f32 1.442695, %v487_v27  ;;  %v513_v50 = vmul.f32 1.442695, %v488_v43  ;;  %v515_v21 = vmul.f32 1.442695, %v489_v44 }
 0x1a0   :  { %1342 = vpow2.f32 %v501_v24  ;;  %v517_v51 = vmul.f32 1.442695, %v490_v39  ;;  %v519_v46 = vmul.f32 1.442695, %v491_v2  ;;  %v521_v8 = vmul.f32 1.442695, %v492_v41 }
 0x1a1   :  { %1344 = vpow2.f32 %v503_v38  ;;  %v525_v52 = vmul.f32 1.442695, %v494_v25  ;;  %v471_v61 = vmul.f32 1.442695, %v470_v0 }
 0x1a2   :  { %1346 = vpow2.f32 %v505_v47 }
 0x1a3   :  { %1348 = vpow2.f32 %v507_v62 }
 0x1a4   :  { %1350 = vpow2.f32 %v509_v42 }
 0x1a5   :  { %1352 = vpow2.f32 %v511_v48 }
 0x1a6   :  { %v1779_v45 = vpop.eup %1334  ;;  %1354 = vpow2.f32 %v513_v50 }
 0x1a7   :  { %v1337_v11 = vpop.eup %1336  ;;  %v1783_v26 = vmul.f32 %v1779_v45, %v1749_v20  ;;  %1356 = vpow2.f32 %v515_v21 }
 0x1a8   :  { %v1339_v53 = vpop.eup %1338  ;;  %v633_v55 = vmul.f32 %v1337_v11, %v1607_v16  ;;  %1358 = vpow2.f32 %v517_v51  ;;  %v752_v51 = vld [vmem:[%s1888_s6 + $0x18] sm:$0xff] }
 0x1a9   :  { %v1341_v15 = vpop.eup %1340  ;;  %v1240_v1 = vpack.c.bf16 %v1339_v53, %v1337_v11  ;;  %v634_v4 = vmul.f32 %v1339_v53, %v1597_v13  ;;  %1360 = vpow2.f32 %v519_v46 }
 0x1aa   :  { %v1343_v7 = vpop.eup %1342  ;;  %v635_v10 = vmul.f32 %v1341_v15, %v1625_v31  ;;  %1362 = vpow2.f32 %v521_v8  ;;  %v629_v8 = vld [vmem:[#allocation4] sm:$0xff] }
 0x1ab   :  { %v1345_v14 = vpop.eup %1344  ;;  %1241 = vmatprep.subr.bf16.mxu1 %v1240_v1  ;;  %v1244_v20 = vpack.c.bf16 %v1343_v7, %v1341_v15  ;;  %v1272_v12 = vpack.c.bf16 %v634_v4, %v633_v55  ;;  %v636_v19 = vmul.f32 %v1343_v7, %v1623_v28  ;;  %1364 = vpow2.f32 %v525_v52 }
 0x1ac   :  { %v1347_v22 = vpop.eup %1346  ;;  %1243 = vmatpush3.bf16.msra.mxu1 %v1240_v1  ;;  %v637_v16 = vmul.f32 %v1345_v14, %v1629_v35  ;;  %1366 = vpow2.f32 %v471_v61 }
 0x1ad   :  { %v1349_v0 = vpop.eup %1348  ;;  %1245 = vmatprep.subr.bf16.mxu1 %v1244_v20  ;;  %1273 = vmatprep.subr.bf16.mxu0 %v1272_v12  ;;  %v1276_v13 = vpack.c.bf16 %v636_v19, %v635_v10  ;;  %v1248_v23 = vpack.c.bf16 %v1347_v22, %v1345_v14  ;;  %v638_v31 = vmul.f32 %v1347_v22, %v1627_v32 }
 0x1ae   :  { %v1351_v30 = vpop.eup %1350  ;;  %1275 = vmatpush3.bf16.msra.mxu0 %v1272_v12  ;;  %v639_v34 = vmul.f32 %v1349_v0, %v1663_v54 }
 0x1af   :  { %v1353_v36 = vpop.eup %1352  ;;  %1277 = vmatprep.subr.bf16.mxu0 %v1276_v13  ;;  %v1280_v28 = vpack.c.bf16 %v638_v31, %v637_v16  ;;  %v1252_v37 = vpack.c.bf16 %v1351_v30, %v1349_v0  ;;  %v640_v29 = vmul.f32 %v1351_v30, %v1659_v49 }
 0x1b0   :  { %v1355_v27 = vpop.eup %1354  ;;  %1247 = vmatpush3.bf16.msra.mxu1 %v1244_v20  ;;  %v641_v35 = vmul.f32 %v1353_v36, %v1689_v17 }
 0x1b1   :  { %v1357_v24 = vpop.eup %1356  ;;  %1249 = vmatprep.subr.bf16.mxu1 %v1248_v23  ;;  %v1284_v38 = vpack.c.bf16 %v640_v29, %v639_v34  ;;  %v1256_v47 = vpack.c.bf16 %v1355_v27, %v1353_v36  ;;  %v642_v32 = vmul.f32 %v1355_v27, %v1685_v9  ;;  %v1030_v36 = vld [vmem:[%s1889_s7] ss:$0 sm:$0xff] }
 0x1b2   :  { %v1359_v43 = vpop.eup %1358  ;;  %1279 = vmatpush3.bf16.msra.mxu0 %v1276_v13  ;;  %v643_v54 = vmul.f32 %v1357_v24, %v1711_v40 }
 0x1b3   :  { %v1361_v44 = vpop.eup %1360  ;;  %1281 = vmatprep.subr.bf16.mxu0 %v1280_v28  ;;  %v1288_v39 = vpack.c.bf16 %v642_v32, %v641_v35  ;;  %v1260_v2 = vpack.c.bf16 %v1359_v43, %v1357_v24  ;;  %v644_v49 = vmul.f32 %v1359_v43, %v1707_v33 }
 0x1b4   :  { %v1363_v41 = vpop.eup %1362  ;;  %1251 = vmatpush3.bf16.msra.mxu1 %v1248_v23  ;;  %v645_v17 = vmul.f32 %v1361_v44, %v1733_v3 }
 0x1b5   :  { %v1365_v62 = vpop.eup %1364  ;;  %1253 = vmatprep.subr.bf16.mxu1 %v1252_v37  ;;  %v1292_v25 = vpack.c.bf16 %v644_v49, %v643_v54  ;;  %v1264_v42 = vpack.c.bf16 %v1363_v41, %v1361_v44  ;;  %v646_v9 = vmul.f32 %v1363_v41, %v1729_v60  ;;  %v750_v60 = vld [vmem:[%s1888_s6 + $0x8] sm:$0xff]  ;;  %v889_v49 = vld [vmem:[%s1890_s10] sm:$0xff] }
 0x1b6   :  { %v1367_v48 = vpop.eup %1366  ;;  %1283 = vmatpush3.bf16.msra.mxu0 %v1280_v28  ;;  %v1268_v40 = vpack.c.bf16 %v1365_v62, %v1779_v45  ;;  %v648_v50 = vmul.f32 %v1365_v62, %v1745_v18  ;;  %v751_v18 = vld [vmem:[%s1888_s6 + $0x10] sm:$0xff]  ;;  %v890_v41 = vld [vmem:[%s1890_s10 + $0x8] sm:$0xff] }
 0x1b7   :  { %1285 = vmatprep.subr.bf16.mxu0 %v1284_v38  ;;  %v1296_v21 = vpack.c.bf16 %v646_v9, %v645_v17  ;;  %v546_v33 = vrot.slane %v1367_v48, %v476_v63  ;;  %v1304_v63 = vpack.c.bf16 %v750_v60, %v749_v56  ;;  %v1308_v46 = vpack.c.bf16 %v752_v51, %v751_v18  ;;  %v891_v17 = vld [vmem:[%s1890_s10 + $0x10] sm:$0xff]  ;;  %v893_v9 = vld [vmem:[%s1890_s10 + $0x20] sm:$0xff]  ;;  %v894_v48 = vld [vmem:[%s1890_s10 + $0x28] sm:$0xff] }
 0x1b8   :  { %1255 = vmatpush3.bf16.msra.mxu1 %v1252_v37  ;;  %v1300_v3 = vpack.c.bf16 %v648_v50, %v1783_v26  ;;  %v1312_v62 = vpack.c.bf16 %v890_v41, %v889_v49  ;;  %v895_v50 = vld [vmem:[%s1890_s10 + $0x30] sm:$0xff] }
 0x1b9   :  { %1257 = vmatprep.subr.bf16.mxu1 %v1256_v47  ;;  %v549_v45 = vmul.f32 %v546_v33, %v541_v57  ;;  %v548_v26 = vmul.f32 %v546_v33, %v540_v58  ;;  %v631_v1 = vmul.f32 %v629_v8, %v546_v33  ;;  %v1033_v57 = vld [vmem:[%s1891_s8] ss:$0 sm:$0xff] }
 0x1ba   :  { %1287 = vmatpush3.bf16.msra.mxu0 %v1284_v38 }
 0x1bb   :  { %1289 = vmatprep.subr.bf16.mxu0 %v1288_v39 }
 0x1bc   :  { %1259 = vmatpush3.bf16.msra.mxu1 %v1256_v47 }
 0x1bd   :  { %1261 = vmatprep.subr.bf16.mxu1 %v1260_v2 }
 0x1be   :  { %1291 = vmatpush3.bf16.msra.mxu0 %v1288_v39 }
 0x1bf   :  { %1293 = vmatprep.subr.bf16.mxu0 %v1292_v25 }
 0x1c0   :  { %1263 = vmatpush3.bf16.msra.mxu1 %v1260_v2 }
 0x1c1   :  { %1265 = vmatprep.subr.bf16.mxu1 %v1264_v42 }
 0x1c2   :  { %1295 = vmatpush3.bf16.msra.mxu0 %v1292_v25  ;;  %v892_v25 = vld [vmem:[%s1890_s10 + $0x18] sm:$0xff] }
 0x1c3   :  { %1297 = vmatprep.subr.bf16.mxu0 %v1296_v21 }
 0x1c4   :  { %1267 = vmatpush3.bf16.msra.mxu1 %v1264_v42  ;;  %v1316_v42 = vpack.c.bf16 %v892_v25, %v891_v17 }
 0x1c5   :  { %1269 = vmatprep.subr.bf16.mxu1 %v1268_v40 }
 0x1c6   :  { %1299 = vmatpush3.bf16.msra.mxu0 %v1296_v21  ;;  %v896_v21 = vld [vmem:[%s1890_s10 + $0x38] sm:$0xff] }
 0x1c7   :  { %1301 = vmatprep.subr.bf16.mxu0 %v1300_v3 }
 0x1c8   :  { %1271 = vmatpush3.bf16.msra.mxu1 %v1268_v40  ;;  %v1320_v40 = vpack.c.bf16 %v894_v48, %v893_v9 }
 0x1c9   :  { %1305 = vmatprep.subr.bf16.mxu1 %v1304_v63 }
 0x1ca   :  { %1303 = vmatpush3.bf16.msra.mxu0 %v1300_v3 }
 0x1cb   :  { %1169 = vmatmul.mubr.msk.f32.vlgmr.msra.gmra.mrb[16].mxu1 %vm535_vm1, %v1379_v59  ;;  %1313 = vmatprep.subr.bf16.mxu0 %v1312_v62 }
 0x1cc   :  { %1307 = vmatpush3.bf16.msra.mxu1 %v1304_v63 }
 0x1cd   :  { %1204 = vmatmul.mubr.msk.f32.vlgmr.msra.gmra.mrb[0].mxu0 %vm535_vm1, %v1379_v59  ;;  %1309 = vmatprep.subr.bf16.mxu1 %v1308_v46  ;;  %v630_v59 = vld [vmem:[#allocation4 + $0x8] sm:$0xff] }
 0x1ce   :  { %v632_v55 = vmul.f32 %v630_v59, %v546_v33  ;;  %1315 = vmatpush3.bf16.msra.mxu0 %v1312_v62  ;;  %v1324_v33 = vpack.c.bf16 %v896_v21, %v895_v50  ;;  %v1034_v59 = vld [vmem:[%s1892_s9] ss:$0 sm:$0xff] }
 0x1cf   :  { %1317 = vmatprep.subr.bf16.mxu0 %v1316_v42 }
 0x1d0   :  { %1311 = vmatpush3.bf16.msra.mxu1 %v1308_v46 }
 0x1d2   :  { %1319 = vmatpush3.bf16.msra.mxu0 %v1316_v42 }
 0x1d3   :  { %1321 = vmatprep.subr.bf16.mxu0 %v1320_v40 }
 0x1d6   :  { %1323 = vmatpush3.bf16.msra.mxu0 %v1320_v40 }
 0x1d7   :  { %1325 = vmatprep.subr.bf16.mxu0 %v1324_v33 }
 0x1da   :  { %1327 = vmatpush3.bf16.msra.mxu0 %v1324_v33 }
 0x29e   :  { %v1170_v11 = vpop.f32.mrb[16].mxu1 }
 0x29f   :  { %v626_v52 = vadd.f32 %v1170_v11, %v549_v45  ;;  %v616_v53 = vpop.f32.mrb[17].mxu1 }
 0x2a0   :  { %v625_v61 = vadd.f32 %v616_v53, %v548_v26  ;;  %v1205_v15 = vpop.f32.mrb[0].mxu0 }
 0x2a1   :  { %628 = vst.msk [vmem:[#allocation3 + $0x8] sm:$0xff] %vm48_vm0, %v626_v52  ;;  %v725_v4 = vadd.f32 %v1205_v15, %v632_v55  ;;  %v715_v7 = vpop.f32.mrb[1].mxu0  ;;  %v1035_v15 = vld [vmem:[%s1893_s11] ss:$0 sm:$0xff] }
 0x2a2   :  { %627 = vst.msk [vmem:[#allocation3] sm:$0xff] %vm48_vm0, %v625_v61  ;;  %v724_v10 = vadd.f32 %v715_v7, %v631_v1 }
 0x2a3   :  { %727 = vst.msk [vmem:[#allocation4 + $0x8] sm:$0xff] %vm48_vm0, %v725_v4 }
 0x2a4   :  { %726 = vst.msk [vmem:[#allocation4] sm:$0xff] %vm48_vm0, %v724_v10 }
 0x2a8   :  { %v734_v14 = vld [vmem:[#allocation3 + $0x8] sm:$0xff] }
 0x2a9   :  { %v733_v20 = vld [vmem:[#allocation3] sm:$0xff]  ;;  %vm736_vm6 = vcmp.gt.f32.partialorder %v734_v14, 0.0 }
 0x2aa   :  { %vm735_vm7 = vcmp.gt.f32.partialorder %v733_v20, 0.0  ;;  %v738_v12 = vsel %vm736_vm6, %v734_v14, 1.0  ;;  %v740_v16 = vld [vmem:[#allocation4 + $0x8] sm:$0xff] }
 0x2ab   :  { %v737_v19 = vsel %vm735_vm7, %v733_v20, 1.0  ;;  %1368 = vrcp.f32 %v738_v12  ;;  %v739_v13 = vld [vmem:[#allocation4] sm:$0xff] }
 0x2ac   :  { %1370 = vrcp.f32 %v737_v19 }
 0x2b5   :  { %v1369_v22 = vpop.eup %1368 }
 0x2b6   :  { %v1371_v0 = vpop.eup %1370  ;;  %v744_v23 = vmul.f32 %v1369_v22, %v740_v16 }
 0x2b7   :  { %v743_v31 = vmul.f32 %v1371_v0, %v739_v13 }
 0x2b8   :  { %v748_v34 = vadd.f32 %v744_v23, %v1465_v6 }
 0x2b9   :  { %v747_v30 = vadd.f32 %v743_v31, %v1460_v5 }
 0x2bb   :  { %1214 = vmatprep.mubr.msk.f32.mxu1 %vm48_vm0, %v747_v30 }
 0x2bc   :  { %1215 = vmatmul.mubr.msk.f32.vlgmr.msra.gmra.mrb[18].mxu1 %vm48_vm0, %v748_v34 }
 0x38f   :  { %v1216_v28 = vpop.f32.mrb[18].mxu1 }
 0x390   :  { %v838_v37 = vadd.f32 %v1216_v28, %v1030_v36  ;;  %v832_v29 = vpop.f32.mrb[19].mxu1 }
 0x391   :  { %v833_v27 = vadd.f32 %v1030_v36, %v832_v29 }
 0x392   :  { %v845_v35 = vsel %vm841_vm8, %v838_v37, 0.0 }
 0x393   :  { %846 = vadd.xlane.f32.xlu1 %v845_v35  ;;  %v842_v5 = vsel %vm841_vm8, %v833_v27, 0.0 }
 0x394   :  { %843 = vadd.xlane.f32.xlu0 %v842_v5 }
 0x420   :  { %v847_v6 = vpop.xlane.xlu1 %846 }
 0x421   :  { %v850_v24 = vmul.f32 0.015625, %v847_v6  ;;  %v844_v38 = vpop.xlane.xlu0 %843 }
 0x422   :  { %v849_v47 = vmul.f32 0.015625, %v844_v38 }
 0x423   :  { %v852_v32 = vsub.f32 %v838_v37, %v850_v24 }
 0x424   :  { %v851_v43 = vsub.f32 %v833_v27, %v849_v47 }
 0x425   :  { %v854_v39 = vmul.f32 %v852_v32, %v852_v32 }
 0x426   :  { %v853_v54 = vmul.f32 %v851_v43, %v851_v43 }
 0x427   :  { %v858_v2 = vsel %vm841_vm8, %v854_v39, 0.0 }
 0x428   :  { %v855_v44 = vsel %vm841_vm8, %v853_v54, 0.0 }
 0x429   :  { %856 = vadd.xlane.f32.xlu0 %v855_v44 }
 0x42d   :  { %859 = vadd.xlane.f32.xlu0 %v858_v2 }
 0x4b6   :  { %v857_v3 = vpop.xlane.xlu0 %856 }
 0x4b7   :  { %v861_v56 = vmul.f32 0.015625, %v857_v3 }
 0x4b9   :  { %v863_v60 = vadd.f32 1e-05, %v861_v56 }
 0x4ba   :  { %v860_v18 = vpop.xlane.xlu0 %859 }
 0x4bb   :  { %1372 = vrsqrt.f32 %v863_v60  ;;  %v862_v63 = vmul.f32 0.015625, %v860_v18 }
 0x4bd   :  { %v864_v51 = vadd.f32 1e-05, %v862_v63 }
 0x4bf   :  { %1374 = vrsqrt.f32 %v864_v51 }
 0x4c5   :  { %v1373_v46 = vpop.eup %1372 }
 0x4c6   :  { %v867_v58 = vmul.f32 %v1373_v46, %v851_v43 }
 0x4c8   :  { %v876_v45 = vmul.f32 %v1033_v57, %v867_v58 }
 0x4c9   :  { %v1375_v8 = vpop.eup %1374 }
 0x4ca   :  { %v868_v11 = vmul.f32 %v1375_v8, %v852_v32  ;;  %v885_v26 = vadd.f32 %v1034_v59, %v876_v45 }
 0x4cc   :  { %v877_v52 = vmul.f32 %v1033_v57, %v868_v11  ;;  %v887_v53 = vmax.f32 %v885_v26, 0.0 }
 0x4ce   :  { %v886_v55 = vadd.f32 %v1034_v59, %v877_v52  ;;  %1233 = vmatprep.mubr.msk.f32.mxu0 %vm841_vm8, %v887_v53 }
 0x4d0   :  { %v888_v61 = vmax.f32 %v886_v55, 0.0 }
 0x4d2   :  { %1234 = vmatmul.mubr.msk.f32.vlgmr.msra.gmra.mrb[2].mxu0 %vm841_vm8, %v888_v61 }
 0x5a5   :  { %v1235_v1 = vpop.f32.mrb[2].mxu0 }
 0x5a6   :  { %v982_v4 = vadd.f32 %v1235_v1, %v1035_v15  ;;  %v976_v7 = vpop.f32.mrb[3].mxu0 }
 0x5a7   :  { %v977_v10 = vadd.f32 %v1035_v15, %v976_v7 }
 0x5a8   :  { %986 = vst.msk [vmem:[%s1894_s12 + $0x8] sm:$0xff] %vm48_vm0, %v982_v4 }
 0x5a9   :  { %985 = vst.msk [vmem:[%s1894_s12] sm:$0xff] %vm48_vm0, %v977_v10 }

</bundles_post_ra>
